<compile_context>
chip_gen: v7x
topology: tpu7x:2x2x1
jax: 0.10.0
libtpu: 0.0.40
codegen_flags: <defaults>
</compile_context>

<pallas_src>
import jax
import jax.numpy as jnp
from jax import lax
from jax.experimental import pallas as pl
from jax.experimental.pallas import tpu as pltpu

EPS = 1e-5
LANE = 128


def _round_up(x, m):
    return (x + m - 1) // m * m


# ----------------------------- Pallas kernels ------------------------------

def _conv3x3_stats_kernel(xp_ref, w_ref, y_ref, ysum_ref, ysq_ref, patch_ref):
    """3x3 conv (stride 1, input pre-padded by 1 on H/W) + BN partial stats.

    xp_ref   : (1, H+2, W+2, C)  padded NHWC input tile (C = Cin padded to 128k)
    w_ref    : (9*C, F)          im2col weights (F = Cout padded to 128k)
    y_ref    : (1, H, W, F)      conv output
    ysum_ref : (1, 1, F)         per-image  sum_{h,w} y
    ysq_ref  : (1, 1, F)         per-image  sum_{h,w} y^2
    patch_ref: (H*W, 9*C) VMEM   im2col scratch
    """
    _, hp2, wp2, C = xp_ref.shape
    H, W = hp2 - 2, wp2 - 2
    F = y_ref.shape[-1]

    # Build the im2col patch matrix: 9 shifted windows written into
    # lane-aligned column blocks (C is a multiple of 128).
    for tap in range(9):
        dy, dx = tap // 3, tap % 3
        win = xp_ref[0, dy:dy + H, dx:dx + W, :].reshape(H * W, C)
        patch_ref[:, tap * C:(tap + 1) * C] = win

    # Single MXU matmul, K = 9*C.
    y = jnp.dot(patch_ref[...], w_ref[...], preferred_element_type=jnp.float32)

    y_ref[...] = y.reshape(1, H, W, F).astype(y_ref.dtype)

    # BatchNorm partial statistics for this image (reduced over H*W).
    ysum_ref[...] = jnp.sum(y, axis=0, keepdims=True).reshape(1, 1, F)
    ysq_ref[...] = jnp.sum(y * y, axis=0, keepdims=True).reshape(1, 1, F)


def _bn_relu_kernel(y_ref, scale_ref, bias_ref, o_ref):
    """Folded batch-norm affine (per-channel scale/bias) + ReLU."""
    y = y_ref[...]
    s = scale_ref[...].reshape(1, 1, 1, -1)
    b = bias_ref[...].reshape(1, 1, 1, -1)
    o_ref[...] = jnp.maximum(y * s + b, 0.0).astype(o_ref.dtype)


# ------------------------------- wrappers -----------------------------------

def conv3x3_stats_pallas(xp_nhwc, w2d):
    """xp_nhwc: (N, H+2, W+2, C) padded input, w2d: (9*C, F) im2col weights.

    Returns (y, ysum, ysq): (N,H,W,F), (N,1,F), (N,1,F).
    """
    N, hp2, wp2, C = xp_nhwc.shape
    H, W = hp2 - 2, wp2 - 2
    F = w2d.shape[-1]
    return pl.pallas_call(
        _conv3x3_stats_kernel,
        out_shape=(
            jax.ShapeDtypeStruct((N, H, W, F), jnp.float32),
            jax.ShapeDtypeStruct((N, 1, F), jnp.float32),
            jax.ShapeDtypeStruct((N, 1, F), jnp.float32),
        ),
        grid_spec=pltpu.PrefetchScalarGridSpec(
            num_scalar_prefetch=0,
            grid=(N,),
            in_specs=[
                pl.BlockSpec((1, hp2, wp2, C), lambda n: (n, 0, 0, 0)),
                pl.BlockSpec((9 * C, F), lambda n: (0, 0)),
            ],
            out_specs=[
                pl.BlockSpec((1, H, W, F), lambda n: (n, 0, 0, 0)),
                pl.BlockSpec((1, 1, F), lambda n: (n, 0, 0)),
                pl.BlockSpec((1, 1, F), lambda n: (n, 0, 0)),
            ],
            scratch_shapes=[pltpu.VMEM((H * W, 9 * C), jnp.float32)],
        ),
        compiler_params=pltpu.CompilerParams(
            dimension_semantics=("parallel",),
            vmem_limit_bytes=32 * 1024 * 1024),
    )(xp_nhwc, w2d)


def bn_relu_pallas(y_nhwc, scale, bias):
    """y_nhwc: (N, H, W, F); scale/bias: (F,) with F a multiple of 128."""
    N, H, W, F = y_nhwc.shape
    scale2 = scale.reshape(1, F).astype(jnp.float32)
    bias2 = bias.reshape(1, F).astype(jnp.float32)
    return pl.pallas_call(
        _bn_relu_kernel,
        out_shape=jax.ShapeDtypeStruct((N, H, W, F), jnp.float32),
        grid_spec=pltpu.PrefetchScalarGridSpec(
            num_scalar_prefetch=0,
            grid=(N,),
            in_specs=[
                pl.BlockSpec((1, H, W, F), lambda n: (n, 0, 0, 0)),
                pl.BlockSpec((1, F), lambda n: (0, 0)),
                pl.BlockSpec((1, F), lambda n: (0, 0)),
            ],
            out_specs=pl.BlockSpec((1, H, W, F), lambda n: (n, 0, 0, 0)),
        ),
        compiler_params=pltpu.CompilerParams(
            dimension_semantics=("parallel",),
            vmem_limit_bytes=32 * 1024 * 1024),
    )(y_nhwc, scale2, bias2)


def single_conv_forward(x_nchw, conv_weight, gamma, beta):
    """SingleConv forward.

    x_nchw     : (N, Cin, H, W)  float32   (PyTorch NCHW input)
    conv_weight: (Cout, Cin, 3, 3)         (PyTorch Conv2d weight, bias=False)
    gamma, beta: (Cout,)                   BatchNorm2d affine params
    Returns (N, Cout, H, W).  BatchNorm2d uses batch statistics (train mode).
    """
    N, Cin, H, W = x_nchw.shape
    Cout = conv_weight.shape[0]
    C = _round_up(Cin, LANE)      # lane-aligned input channels
    F = _round_up(Cout, LANE)     # lane-aligned output channels

    # NCHW -> NHWC, channel pad to C and spatial halo pad of 1 (one fused
    # XLA producer pass over the input).
    x_nhwc = jnp.transpose(x_nchw.astype(jnp.float32), (0, 2, 3, 1))
    xp = jnp.pad(x_nhwc, ((0, 0), (1, 1), (1, 1), (0, C - Cin)))

    # (Cout,Cin,3,3) -> (3,3,Cin,Cout) -> (9,C,F) -> (9*C, F); tap = dy*3+dx.
    w = jnp.transpose(conv_weight.astype(jnp.float32), (2, 3, 1, 0))
    w = w.reshape(9, Cin, Cout)
    w = jnp.pad(w, ((0, 0), (0, C - Cin), (0, F - Cout))).reshape(9 * C, F)

    # Hot path 1: conv + fused BN partial statistics (Pallas, MXU).
    y, ysum, ysq = conv3x3_stats_pallas(xp, w)

    # Finalize BN batch statistics from the tiny per-image partials.
    count = N * H * W
    mean = jnp.sum(ysum, axis=(0, 1)) / count
    ex2 = jnp.sum(ysq, axis=(0, 1)) / count
    var = jnp.maximum(ex2 - mean * mean, 0.0)     # biased variance (BN forward)
    gamma_p = jnp.pad(gamma.astype(jnp.float32), (0, F - Cout))
    beta_p = jnp.pad(beta.astype(jnp.float32), (0, F - Cout))
    scale = gamma_p * lax.rsqrt(var + EPS)
    bias = beta_p - mean * scale
    # TODO(synk): BatchNorm2d running_mean/running_var buffer updates are not
    # modeled (the training-mode forward output does not depend on them).

    # Hot path 2: fused affine + ReLU (Pallas, VPU), lane-dense output.
    out_nhwc = bn_relu_pallas(y, scale, bias)

    # Drop channel padding, back to NCHW (single fused slice + transpose).
    return jnp.transpose(out_nhwc[..., :Cout], (0, 3, 1, 2))


# ------------------------------- reference ----------------------------------

def _reference(x_nchw, conv_weight, gamma, beta):
    y = lax.conv_general_dilated(
        x_nchw.astype(jnp.float32), conv_weight.astype(jnp.float32),
        window_strides=(1, 1), padding=((1, 1), (1, 1)),
        dimension_numbers=("NCHW", "OIHW", "NCHW"))
    mean = jnp.mean(y, axis=(0, 2, 3), keepdims=True)
    var = jnp.var(y, axis=(0, 2, 3), keepdims=True)
    yhat = (y - mean) / jnp.sqrt(var + EPS)
    yhat = yhat * gamma.reshape(1, -1, 1, 1) + beta.reshape(1, -1, 1, 1)
    return jnp.maximum(yhat, 0.0)


# --------------------------------- main --------------------------------------

if __name__ == "__main__":
    key = jax.random.PRNGKey(0)
    k_x, k_w = jax.random.split(key)

    N, Cin, Cout, H, W = 2, 4, 8, 16, 16

    x = jax.random.normal(k_x, (N, Cin, H, W), dtype=jnp.float32)
    # Deterministic synthetic Conv2d weight (Cout, Cin, 3, 3), bias=False.
    conv_w = jax.random.normal(k_w, (Cout, Cin, 3, 3), dtype=jnp.float32) * 0.1
    # Non-trivial BatchNorm2d affine params (deterministic).
    gamma = jnp.linspace(0.5, 1.5, Cout, dtype=jnp.float32)
    beta = jnp.linspace(-0.2, 0.2, Cout, dtype=jnp.float32)

    fwd = jax.jit(single_conv_forward)
    out = jax.block_until_ready(fwd(x, conv_w, gamma, beta))

    ref = jax.block_until_ready(_reference(x, conv_w, gamma, beta))
    assert out.shape == (N, Cout, H, W)
    assert jnp.allclose(out, ref, atol=2e-4, rtol=2e-4), "mismatch vs reference"

    print("KERNEL_OK")
</pallas_src>

<mosaic_0001>
module attributes {stable_mosaic.version = 11 : i64} {
  func.func @_conv3x3_stats_kernel(%arg0: i32, %arg1: memref<1x18x18x128xf32, #tpu.memory_space<vmem>>, %arg2: memref<1152x128xf32, #tpu.memory_space<vmem>>, %arg3: memref<1x16x16x128xf32, #tpu.memory_space<vmem>>, %arg4: memref<1x1x128xf32, #tpu.memory_space<vmem>>, %arg5: memref<1x1x128xf32, #tpu.memory_space<vmem>>, %arg6: memref<256x1152xf32, #tpu.memory_space<vmem>>) attributes {dimension_semantics = [#tpu.dimension_semantics<parallel>], iteration_bounds = array<i64: 2>, scalar_prefetch = 0 : i64, scratch_operands = 1 : i64, tpu.core_type = #tpu.core_type<tc>, window_params = [{transform_indices = @transform_0, window_bounds = array<i64: 1, 18, 18, 128>}, {pipeline_mode = #tpu.pipeline_mode<synchronous>, transform_indices = @transform_1, window_bounds = array<i64: 1152, 128>}, {transform_indices = @transform_2, window_bounds = array<i64: 1, 16, 16, 128>}, {transform_indices = @transform_3, window_bounds = array<i64: 1, 1, 128>}, {transform_indices = @transform_4, window_bounds = array<i64: 1, 1, 128>}]} {
    %c0 = arith.constant 0 : index
    %c0_0 = arith.constant 0 : index
    %c0_1 = arith.constant 0 : index
    %c0_2 = arith.constant 0 : index
    %0 = vector.load %arg1[%c0, %c0_0, %c0_1, %c0_2] : memref<1x18x18x128xf32, #tpu.memory_space<vmem>>, vector<1x16x16x128xf32>
    %1 = vector.shape_cast %0 : vector<1x16x16x128xf32> to vector<16x16x128xf32>
    %2 = vector.shape_cast %1 : vector<16x16x128xf32> to vector<256x128xf32>
    %c0_3 = arith.constant 0 : index
    %c0_4 = arith.constant 0 : index
    %3 = vector.load %arg6[%c0_3, %c0_4] : memref<256x1152xf32, #tpu.memory_space<vmem>>, vector<256x128xf32>
    tpu.vector_store %arg6[%c0_3, %c0_4], %2 {strides = array<i32>} : memref<256x1152xf32, #tpu.memory_space<vmem>>, vector<256x128xf32>,
    %c0_5 = arith.constant 0 : index
    %c0_6 = arith.constant 0 : index
    %c1 = arith.constant 1 : index
    %c0_7 = arith.constant 0 : index
    %4 = vector.load %arg1[%c0_5, %c0_6, %c1, %c0_7] : memref<1x18x18x128xf32, #tpu.memory_space<vmem>>, vector<1x16x16x128xf32>
    %5 = vector.shape_cast %4 : vector<1x16x16x128xf32> to vector<16x16x128xf32>
    %6 = vector.shape_cast %5 : vector<16x16x128xf32> to vector<256x128xf32>
    %c0_8 = arith.constant 0 : index
    %c128 = arith.constant 128 : index
    %7 = vector.load %arg6[%c0_8, %c128] : memref<256x1152xf32, #tpu.memory_space<vmem>>, vector<256x128xf32>
    tpu.vector_store %arg6[%c0_8, %c128], %6 {strides = array<i32>} : memref<256x1152xf32, #tpu.memory_space<vmem>>, vector<256x128xf32>,
    %c0_9 = arith.constant 0 : index
    %c0_10 = arith.constant 0 : index
    %c2 = arith.constant 2 : index
    %c0_11 = arith.constant 0 : index
    %8 = vector.load %arg1[%c0_9, %c0_10, %c2, %c0_11] : memref<1x18x18x128xf32, #tpu.memory_space<vmem>>, vector<1x16x16x128xf32>
    %9 = vector.shape_cast %8 : vector<1x16x16x128xf32> to vector<16x16x128xf32>
    %10 = vector.shape_cast %9 : vector<16x16x128xf32> to vector<256x128xf32>
    %c0_12 = arith.constant 0 : index
    %c256 = arith.constant 256 : index
    %11 = vector.load %arg6[%c0_12, %c256] : memref<256x1152xf32, #tpu.memory_space<vmem>>, vector<256x128xf32>
    tpu.vector_store %arg6[%c0_12, %c256], %10 {strides = array<i32>} : memref<256x1152xf32, #tpu.memory_space<vmem>>, vector<256x128xf32>,
    %c0_13 = arith.constant 0 : index
    %c1_14 = arith.constant 1 : index
    %c0_15 = arith.constant 0 : index
    %c0_16 = arith.constant 0 : index
    %12 = vector.load %arg1[%c0_13, %c1_14, %c0_15, %c0_16] : memref<1x18x18x128xf32, #tpu.memory_space<vmem>>, vector<1x16x16x128xf32>
    %13 = vector.shape_cast %12 : vector<1x16x16x128xf32> to vector<16x16x128xf32>
    %14 = vector.shape_cast %13 : vector<16x16x128xf32> to vector<256x128xf32>
    %c0_17 = arith.constant 0 : index
    %c384 = arith.constant 384 : index
    %15 = vector.load %arg6[%c0_17, %c384] : memref<256x1152xf32, #tpu.memory_space<vmem>>, vector<256x128xf32>
    tpu.vector_store %arg6[%c0_17, %c384], %14 {strides = array<i32>} : memref<256x1152xf32, #tpu.memory_space<vmem>>, vector<256x128xf32>,
    %c0_18 = arith.constant 0 : index
    %c1_19 = arith.constant 1 : index
    %c1_20 = arith.constant 1 : index
    %c0_21 = arith.constant 0 : index
    %16 = vector.load %arg1[%c0_18, %c1_19, %c1_20, %c0_21] : memref<1x18x18x128xf32, #tpu.memory_space<vmem>>, vector<1x16x16x128xf32>
    %17 = vector.shape_cast %16 : vector<1x16x16x128xf32> to vector<16x16x128xf32>
    %18 = vector.shape_cast %17 : vector<16x16x128xf32> to vector<256x128xf32>
    %c0_22 = arith.constant 0 : index
    %c512 = arith.constant 512 : index
    %19 = vector.load %arg6[%c0_22, %c512] : memref<256x1152xf32, #tpu.memory_space<vmem>>, vector<256x128xf32>
    tpu.vector_store %arg6[%c0_22, %c512], %18 {strides = array<i32>} : memref<256x1152xf32, #tpu.memory_space<vmem>>, vector<256x128xf32>,
    %c0_23 = arith.constant 0 : index
    %c1_24 = arith.constant 1 : index
    %c2_25 = arith.constant 2 : index
    %c0_26 = arith.constant 0 : index
    %20 = vector.load %arg1[%c0_23, %c1_24, %c2_25, %c0_26] : memref<1x18x18x128xf32, #tpu.memory_space<vmem>>, vector<1x16x16x128xf32>
    %21 = vector.shape_cast %20 : vector<1x16x16x128xf32> to vector<16x16x128xf32>
    %22 = vector.shape_cast %21 : vector<16x16x128xf32> to vector<256x128xf32>
    %c0_27 = arith.constant 0 : index
    %c640 = arith.constant 640 : index
    %23 = vector.load %arg6[%c0_27, %c640] : memref<256x1152xf32, #tpu.memory_space<vmem>>, vector<256x128xf32>
    tpu.vector_store %arg6[%c0_27, %c640], %22 {strides = array<i32>} : memref<256x1152xf32, #tpu.memory_space<vmem>>, vector<256x128xf32>,
    %c0_28 = arith.constant 0 : index
    %c2_29 = arith.constant 2 : index
    %c0_30 = arith.constant 0 : index
    %c0_31 = arith.constant 0 : index
    %24 = vector.load %arg1[%c0_28, %c2_29, %c0_30, %c0_31] : memref<1x18x18x128xf32, #tpu.memory_space<vmem>>, vector<1x16x16x128xf32>
    %25 = vector.shape_cast %24 : vector<1x16x16x128xf32> to vector<16x16x128xf32>
    %26 = vector.shape_cast %25 : vector<16x16x128xf32> to vector<256x128xf32>
    %c0_32 = arith.constant 0 : index
    %c768 = arith.constant 768 : index
    %27 = vector.load %arg6[%c0_32, %c768] : memref<256x1152xf32, #tpu.memory_space<vmem>>, vector<256x128xf32>
    tpu.vector_store %arg6[%c0_32, %c768], %26 {strides = array<i32>} : memref<256x1152xf32, #tpu.memory_space<vmem>>, vector<256x128xf32>,
    %c0_33 = arith.constant 0 : index
    %c2_34 = arith.constant 2 : index
    %c1_35 = arith.constant 1 : index
    %c0_36 = arith.constant 0 : index
    %28 = vector.load %arg1[%c0_33, %c2_34, %c1_35, %c0_36] : memref<1x18x18x128xf32, #tpu.memory_space<vmem>>, vector<1x16x16x128xf32>
    %29 = vector.shape_cast %28 : vector<1x16x16x128xf32> to vector<16x16x128xf32>
    %30 = vector.shape_cast %29 : vector<16x16x128xf32> to vector<256x128xf32>
    %c0_37 = arith.constant 0 : index
    %c896 = arith.constant 896 : index
    %31 = vector.load %arg6[%c0_37, %c896] : memref<256x1152xf32, #tpu.memory_space<vmem>>, vector<256x128xf32>
    tpu.vector_store %arg6[%c0_37, %c896], %30 {strides = array<i32>} : memref<256x1152xf32, #tpu.memory_space<vmem>>, vector<256x128xf32>,
    %c0_38 = arith.constant 0 : index
    %c2_39 = arith.constant 2 : index
    %c2_40 = arith.constant 2 : index
    %c0_41 = arith.constant 0 : index
    %32 = vector.load %arg1[%c0_38, %c2_39, %c2_40, %c0_41] : memref<1x18x18x128xf32, #tpu.memory_space<vmem>>, vector<1x16x16x128xf32>
    %33 = vector.shape_cast %32 : vector<1x16x16x128xf32> to vector<16x16x128xf32>
    %34 = vector.shape_cast %33 : vector<16x16x128xf32> to vector<256x128xf32>
    %c0_42 = arith.constant 0 : index
    %c1024 = arith.constant 1024 : index
    %35 = vector.load %arg6[%c0_42, %c1024] : memref<256x1152xf32, #tpu.memory_space<vmem>>, vector<256x128xf32>
    tpu.vector_store %arg6[%c0_42, %c1024], %34 {strides = array<i32>} : memref<256x1152xf32, #tpu.memory_space<vmem>>, vector<256x128xf32>,
    %c0_43 = arith.constant 0 : index
    %c0_44 = arith.constant 0 : index
    %36 = vector.load %arg6[%c0_43, %c0_44] : memref<256x1152xf32, #tpu.memory_space<vmem>>, vector<256x1152xf32>
    %c0_45 = arith.constant 0 : index
    %c0_46 = arith.constant 0 : index
    %37 = vector.load %arg2[%c0_45, %c0_46] : memref<1152x128xf32, #tpu.memory_space<vmem>>, vector<1152x128xf32>
    %cst = arith.constant dense<0.000000e+00> : vector<256x128xf32>
    %38 = tpu.matmul %36, %37, %cst {dimension_numbers = #tpu.dot_dimension_numbers<[1], [0], [0], [1], [0, 0, 1, 1], [], []>} : vector<256x1152xf32>, vector<1152x128xf32>, vector<256x128xf32> -> vector<256x128xf32>
    %39 = vector.shape_cast %38 : vector<256x128xf32> to vector<1x16x16x128xf32>
    %c0_47 = arith.constant 0 : index
    %c0_48 = arith.constant 0 : index
    %c0_49 = arith.constant 0 : index
    %c0_50 = arith.constant 0 : index
    %40 = vector.load %arg3[%c0_47, %c0_48, %c0_49, %c0_50] : memref<1x16x16x128xf32, #tpu.memory_space<vmem>>, vector<1x16x16x128xf32>
    tpu.vector_store %arg3[%c0_47, %c0_48, %c0_49, %c0_50], %39 {strides = array<i32>} : memref<1x16x16x128xf32, #tpu.memory_space<vmem>>, vector<1x16x16x128xf32>,
    %cst_51 = arith.constant dense<0.000000e+00> : vector<128xf32>
    %41 = vector.multi_reduction <add>, %38, %cst_51 [0] : vector<256x128xf32> to vector<128xf32>
    %42 = vector.shape_cast %41 : vector<128xf32> to vector<1x128xf32>
    %43 = vector.shape_cast %42 : vector<1x128xf32> to vector<1x1x128xf32>
    %c0_52 = arith.constant 0 : index
    %c0_53 = arith.constant 0 : index
    %c0_54 = arith.constant 0 : index
    %44 = vector.load %arg4[%c0_52, %c0_53, %c0_54] : memref<1x1x128xf32, #tpu.memory_space<vmem>>, vector<1x1x128xf32>
    tpu.vector_store %arg4[%c0_52, %c0_53, %c0_54], %43 {strides = array<i32>} : memref<1x1x128xf32, #tpu.memory_space<vmem>>, vector<1x1x128xf32>,
    %45 = arith.mulf %38, %38 : vector<256x128xf32>
    %cst_55 = arith.constant dense<0.000000e+00> : vector<128xf32>
    %46 = vector.multi_reduction <add>, %45, %cst_55 [0] : vector<256x128xf32> to vector<128xf32>
    %47 = vector.shape_cast %46 : vector<128xf32> to vector<1x128xf32>
    %48 = vector.shape_cast %47 : vector<1x128xf32> to vector<1x1x128xf32>
    %c0_56 = arith.constant 0 : index
    %c0_57 = arith.constant 0 : index
    %c0_58 = arith.constant 0 : index
    %49 = vector.load %arg5[%c0_56, %c0_57, %c0_58] : memref<1x1x128xf32, #tpu.memory_space<vmem>>, vector<1x1x128xf32>
    tpu.vector_store %arg5[%c0_56, %c0_57, %c0_58], %48 {strides = array<i32>} : memref<1x1x128xf32, #tpu.memory_space<vmem>>, vector<1x1x128xf32>,
    return
  }
  func.func @transform_0(%arg0: i32) -> (i32, i32, i32, i32) {
    %c0_i32 = arith.constant 0 : i32
    %c0_i32_0 = arith.constant 0 : i32
    %c0_i32_1 = arith.constant 0 : i32
    %c0_i32_2 = arith.constant 0 : i32
    return %arg0, %c0_i32, %c0_i32_0, %c0_i32_1 : i32, i32, i32, i32
  }
  func.func @transform_1(%arg0: i32) -> (i32, i32) {
    %c0_i32 = arith.constant 0 : i32
    %c0_i32_0 = arith.constant 0 : i32
    %c0_i32_1 = arith.constant 0 : i32
    return %c0_i32, %c0_i32_0 : i32, i32
  }
  func.func @transform_2(%arg0: i32) -> (i32, i32, i32, i32) {
    %c0_i32 = arith.constant 0 : i32
    %c0_i32_0 = arith.constant 0 : i32
    %c0_i32_1 = arith.constant 0 : i32
    %c0_i32_2 = arith.constant 0 : i32
    return %arg0, %c0_i32, %c0_i32_0, %c0_i32_1 : i32, i32, i32, i32
  }
  func.func @transform_3(%arg0: i32) -> (i32, i32, i32) {
    %c0_i32 = arith.constant 0 : i32
    %c0_i32_0 = arith.constant 0 : i32
    %c0_i32_1 = arith.constant 0 : i32
    return %arg0, %c0_i32, %c0_i32_0 : i32, i32, i32
  }
  func.func @transform_4(%arg0: i32) -> (i32, i32, i32) {
    %c0_i32 = arith.constant 0 : i32
    %c0_i32_0 = arith.constant 0 : i32
    %c0_i32_1 = arith.constant 0 : i32
    return %arg0, %c0_i32, %c0_i32_0 : i32, i32, i32
  }
}

module attributes {stable_mosaic.version = 11 : i64} {
  func.func @_bn_relu_kernel(%arg0: i32, %arg1: memref<1x16x16x128xf32, #tpu.memory_space<vmem>>, %arg2: memref<1x128xf32, #tpu.memory_space<vmem>>, %arg3: memref<1x128xf32, #tpu.memory_space<vmem>>, %arg4: memref<1x16x16x128xf32, #tpu.memory_space<vmem>>) attributes {dimension_semantics = [#tpu.dimension_semantics<parallel>], iteration_bounds = array<i64: 2>, scalar_prefetch = 0 : i64, scratch_operands = 0 : i64, tpu.core_type = #tpu.core_type<tc>, window_params = [{transform_indices = @transform_0, window_bounds = array<i64: 1, 16, 16, 128>}, {pipeline_mode = #tpu.pipeline_mode<synchronous>, transform_indices = @transform_1, window_bounds = array<i64: 1, 128>}, {pipeline_mode = #tpu.pipeline_mode<synchronous>, transform_indices = @transform_2, window_bounds = array<i64: 1, 128>}, {transform_indices = @transform_3, window_bounds = array<i64: 1, 16, 16, 128>}]} {
    %c0 = arith.constant 0 : index
    %c0_0 = arith.constant 0 : index
    %c0_1 = arith.constant 0 : index
    %c0_2 = arith.constant 0 : index
    %0 = vector.load %arg1[%c0, %c0_0, %c0_1, %c0_2] : memref<1x16x16x128xf32, #tpu.memory_space<vmem>>, vector<1x16x16x128xf32>
    %c0_3 = arith.constant 0 : index
    %c0_4 = arith.constant 0 : index
    %1 = vector.load %arg2[%c0_3, %c0_4] : memref<1x128xf32, #tpu.memory_space<vmem>>, vector<1x128xf32>
    %2 = vector.shape_cast %1 : vector<1x128xf32> to vector<1x1x1x128xf32>
    %c0_5 = arith.constant 0 : index
    %c0_6 = arith.constant 0 : index
    %3 = vector.load %arg3[%c0_5, %c0_6] : memref<1x128xf32, #tpu.memory_space<vmem>>, vector<1x128xf32>
    %4 = vector.shape_cast %3 : vector<1x128xf32> to vector<1x1x1x128xf32>
    %5 = vector.broadcast %2 : vector<1x1x1x128xf32> to vector<1x16x16x128xf32>
    %6 = arith.mulf %0, %5 : vector<1x16x16x128xf32>
    %7 = vector.broadcast %4 : vector<1x1x1x128xf32> to vector<1x16x16x128xf32>
    %8 = arith.addf %6, %7 : vector<1x16x16x128xf32>
    %cst = arith.constant 0.000000e+00 : f32
    %9 = vector.broadcast %cst : f32 to vector<1x16x16x128xf32>
    %10 = arith.maximumf %8, %9 : vector<1x16x16x128xf32>
    %c0_7 = arith.constant 0 : index
    %c0_8 = arith.constant 0 : index
    %c0_9 = arith.constant 0 : index
    %c0_10 = arith.constant 0 : index
    %11 = vector.load %arg4[%c0_7, %c0_8, %c0_9, %c0_10] : memref<1x16x16x128xf32, #tpu.memory_space<vmem>>, vector<1x16x16x128xf32>
    tpu.vector_store %arg4[%c0_7, %c0_8, %c0_9, %c0_10], %10 {strides = array<i32>} : memref<1x16x16x128xf32, #tpu.memory_space<vmem>>, vector<1x16x16x128xf32>,
    return
  }
  func.func @transform_0(%arg0: i32) -> (i32, i32, i32, i32) {
    %c0_i32 = arith.constant 0 : i32
    %c0_i32_0 = arith.constant 0 : i32
    %c0_i32_1 = arith.constant 0 : i32
    %c0_i32_2 = arith.constant 0 : i32
    return %arg0, %c0_i32, %c0_i32_0, %c0_i32_1 : i32, i32, i32, i32
  }
  func.func @transform_1(%arg0: i32) -> (i32, i32) {
    %c0_i32 = arith.constant 0 : i32
    %c0_i32_0 = arith.constant 0 : i32
    %c0_i32_1 = arith.constant 0 : i32
    return %c0_i32, %c0_i32_0 : i32, i32
  }
  func.func @transform_2(%arg0: i32) -> (i32, i32) {
    %c0_i32 = arith.constant 0 : i32
    %c0_i32_0 = arith.constant 0 : i32
    %c0_i32_1 = arith.constant 0 : i32
    return %c0_i32, %c0_i32_0 : i32, i32
  }
  func.func @transform_3(%arg0: i32) -> (i32, i32, i32, i32) {
    %c0_i32 = arith.constant 0 : i32
    %c0_i32_0 = arith.constant 0 : i32
    %c0_i32_1 = arith.constant 0 : i32
    %c0_i32_2 = arith.constant 0 : i32
    return %arg0, %c0_i32, %c0_i32_0, %c0_i32_1 : i32, i32, i32, i32
  }
}

</mosaic_0001>

<bundles_post_ra>
// kernel: single_conv_forward.3
= control target key start
LH: loop header
LB: loop body
LE: loop exit
PB: predicated region body
PF: predicated region fallthrough
CT: control target
= control target key end

     0   :  { %s451_s12 = smov 0   ;;  %s610_s0 = inlined_call_operand.vmem [shape: f32[2,16,16,128], index: 0, kind: input, shape index: {}]   ;;  %s611_s1 = inlined_call_operand.vmem [shape: f32[1,128], index: 1, kind: input, shape index: {}]   ;;  %s612_s2 = inlined_call_operand.vmem [shape: f32[1,128], index: 2, kind: input, shape index: {}]   ;;  %s613_s3 = inlined_call_operand.vmem [shape: f32[2,16,16,128], index: 3, kind: output, shape index: {}]  }
   0x1 LB: > { %s400_s13 = sadd.s32 4294967295, %s429_s12   ;;  %p404_p0 = scmp.ge.s32.totalorder %s429_s12, 1  ;;  %s429_s12 = sphi %s451_s12, %s13_s12  }
   0x2   : > { %p137_p1 = scmp.lt.s32.totalorder %s429_s12, 3 }
   0x4   : > { %p138_p2 = pnand %p404_p0, %p137_p1 }
   0x5   : > { %p161_p3 = scmp.lt.s32.totalorder (!%p138_p2), %s400_s13, 1  ;;  %v462_v0 = vld [vmem:[%s611_s1] ss:$0 sm:$0xff] (!%p138_p2) }
   0x6   : > { %141 = sbr.rel (%p138_p2) target bundleno = 46 (0x2e), region = 32  ;;  %v472_v1 = vld [vmem:[%s612_s2] ss:$0 sm:$0xff] (!%p138_p2) }
   0xd   : > { %s615_s13 = smov (!%p161_p3, %s400_s13), 1 }
   0xe   : > { %s413_s14 = sshll.u32 %s615_s13, 8 }
   0xf   : > { %s467_s19 = scalar_lea.vmem %s610_s0, %s413_s14  ;;  %s495_s24 = scalar_lea.vmem %s613_s3, %s413_s14 }
  0x10   : > { %v171_v2 = vld [vmem:[%s467_s19] sm:$0xff]  ;;  %v172_v3 = vld [vmem:[%s467_s19 + $0x8] sm:$0xff]  ;;  %v173_v4 = vld [vmem:[%s467_s19 + $0x10] sm:$0xff] }
  0x11   : > { %v211_v5 = vmul.f32 %v462_v0, %v171_v2  ;;  %v212_v6 = vmul.f32 %v462_v0, %v172_v3  ;;  %v213_v7 = vmul.f32 %v462_v0, %v173_v4  ;;  %v174_v8 = vld [vmem:[%s467_s19 + $0x18] sm:$0xff]  ;;  %v175_v9 = vld [vmem:[%s467_s19 + $0x20] sm:$0xff]  ;;  %v176_v10 = vld [vmem:[%s467_s19 + $0x28] sm:$0xff] }
  0x12   : > { %v214_v11 = vmul.f32 %v462_v0, %v174_v8  ;;  %v215_v12 = vmul.f32 %v462_v0, %v175_v9  ;;  %v216_v13 = vmul.f32 %v462_v0, %v176_v10  ;;  %v177_v14 = vld [vmem:[%s467_s19 + $0x30] sm:$0xff]  ;;  %v178_v15 = vld [vmem:[%s467_s19 + $0x38] sm:$0xff]  ;;  %v179_v24 = vld [vmem:[%s467_s19 + $0x40] sm:$0xff] }
  0x13   : > { %v249_v16 = vadd.f32 %v472_v1, %v211_v5  ;;  %v250_v17 = vadd.f32 %v472_v1, %v212_v6  ;;  %v251_v18 = vadd.f32 %v472_v1, %v213_v7  ;;  %v217_v19 = vmul.f32 %v462_v0, %v177_v14  ;;  %v180_v25 = vld [vmem:[%s467_s19 + $0x48] sm:$0xff]  ;;  %v181_v26 = vld [vmem:[%s467_s19 + $0x50] sm:$0xff]  ;;  %v182_v31 = vld [vmem:[%s467_s19 + $0x58] sm:$0xff] }
  0x14   : > { %v252_v20 = vadd.f32 %v472_v1, %v214_v11  ;;  %v253_v21 = vadd.f32 %v472_v1, %v215_v12  ;;  %v254_v22 = vadd.f32 %v472_v1, %v216_v13  ;;  %v218_v23 = vmul.f32 %v462_v0, %v178_v15  ;;  %v183_v32 = vld [vmem:[%s467_s19 + $0x60] sm:$0xff]  ;;  %v184_v33 = vld [vmem:[%s467_s19 + $0x68] sm:$0xff]  ;;  %v185_v38 = vld [vmem:[%s467_s19 + $0x70] sm:$0xff] }
  0x15   : > { %v281_v27 = vmax.f32 %v249_v16, 0.0  ;;  %v282_v28 = vmax.f32 %v250_v17, 0.0  ;;  %v283_v29 = vmax.f32 %v251_v18, 0.0  ;;  %v255_v30 = vadd.f32 %v472_v1, %v217_v19  ;;  %v186_v43 = vld [vmem:[%s467_s19 + $0x78] sm:$0xff]  ;;  %v187_v56 = vld [vmem:[%s467_s19 + $0x80] sm:$0xff]  ;;  %v188_v57 = vld [vmem:[%s467_s19 + $0x88] sm:$0xff] }
  0x16   : > { %v284_v34 = vmax.f32 %v252_v20, 0.0  ;;  %v285_v35 = vmax.f32 %v253_v21, 0.0  ;;  %v286_v36 = vmax.f32 %v254_v22, 0.0  ;;  %v256_v37 = vadd.f32 %v472_v1, %v218_v23  ;;  %v189_v58 = vld [vmem:[%s467_s19 + $0x90] sm:$0xff]  ;;  %v190_v63 = vld [vmem:[%s467_s19 + $0x98] sm:$0xff]  ;;  %v191_v2 = vld [vmem:[%s467_s19 + $0xa0] sm:$0xff] }
  0x17   : > { %313 = vst [vmem:[%s495_s24] sm:$0xff] %v281_v27  ;;  %314 = vst [vmem:[%s495_s24 + $0x8] sm:$0xff] %v282_v28  ;;  %v287_v39 = vmax.f32 %v255_v30, 0.0  ;;  %v219_v40 = vmul.f32 %v462_v0, %v179_v24  ;;  %v220_v41 = vmul.f32 %v462_v0, %v180_v25  ;;  %v221_v42 = vmul.f32 %v462_v0, %v181_v26  ;;  %v192_v3 = vld [vmem:[%s467_s19 + $0xa8] sm:$0xff]  ;;  %v193_v8 = vld [vmem:[%s467_s19 + $0xb0] sm:$0xff] }
  0x18   : > { %315 = vst [vmem:[%s495_s24 + $0x10] sm:$0xff] %v283_v29  ;;  %316 = vst [vmem:[%s495_s24 + $0x18] sm:$0xff] %v284_v34  ;;  %v288_v44 = vmax.f32 %v256_v37, 0.0  ;;  %v222_v45 = vmul.f32 %v462_v0, %v182_v31  ;;  %v223_v46 = vmul.f32 %v462_v0, %v183_v32  ;;  %v224_v47 = vmul.f32 %v462_v0, %v184_v33  ;;  %v194_v13 = vld [vmem:[%s467_s19 + $0xb8] sm:$0xff]  ;;  %v195_v26 = vld [vmem:[%s467_s19 + $0xc0] sm:$0xff] }
  0x19   : > { %317 = vst [vmem:[%s495_s24 + $0x20] sm:$0xff] %v285_v35  ;;  %318 = vst [vmem:[%s495_s24 + $0x28] sm:$0xff] %v286_v36  ;;  %v257_v48 = vadd.f32 %v472_v1, %v219_v40  ;;  %v258_v49 = vadd.f32 %v472_v1, %v220_v41  ;;  %v259_v50 = vadd.f32 %v472_v1, %v221_v42  ;;  %v196_v27 = vld [vmem:[%s467_s19 + $0xc8] sm:$0xff]  ;;  %v197_v28 = vld [vmem:[%s467_s19 + $0xd0] sm:$0xff] }
  0x1a   : > { %319 = vst [vmem:[%s495_s24 + $0x30] sm:$0xff] %v287_v39  ;;  %v225_v51 = vmul.f32 %v462_v0, %v185_v38  ;;  %320 = vst [vmem:[%s495_s24 + $0x38] sm:$0xff] %v288_v44  ;;  %v260_v52 = vadd.f32 %v472_v1, %v222_v45  ;;  %v261_v53 = vadd.f32 %v472_v1, %v223_v46  ;;  %v198_v33 = vld [vmem:[%s467_s19 + $0xd8] sm:$0xff]  ;;  %v199_v34 = vld [vmem:[%s467_s19 + $0xe0] sm:$0xff] }
  0x1b   : > { %v262_v54 = vadd.f32 %v472_v1, %v224_v47  ;;  %v226_v55 = vmul.f32 %v462_v0, %v186_v43  ;;  %v289_v59 = vmax.f32 %v257_v48, 0.0  ;;  %v290_v60 = vmax.f32 %v258_v49, 0.0  ;;  %v200_v35 = vld [vmem:[%s467_s19 + $0xe8] sm:$0xff]  ;;  %v201_v40 = vld [vmem:[%s467_s19 + $0xf0] sm:$0xff]  ;;  %v202_v45 = vld [vmem:[%s467_s19 + $0xf8] sm:$0xff] }
  0x1c   : > { %v291_v61 = vmax.f32 %v259_v50, 0.0  ;;  %v263_v62 = vadd.f32 %v472_v1, %v225_v51  ;;  %v292_v4 = vmax.f32 %v260_v52, 0.0  ;;  %v293_v5 = vmax.f32 %v261_v53, 0.0 }
  0x1d   : > { %v294_v6 = vmax.f32 %v262_v54, 0.0  ;;  %v264_v7 = vadd.f32 %v472_v1, %v226_v55  ;;  %321 = vst [vmem:[%s495_s24 + $0x40] sm:$0xff] %v289_v59  ;;  %322 = vst [vmem:[%s495_s24 + $0x48] sm:$0xff] %v290_v60  ;;  %v227_v10 = vmul.f32 %v462_v0, %v187_v56  ;;  %v228_v11 = vmul.f32 %v462_v0, %v188_v57 }
  0x1e   : > { %323 = vst [vmem:[%s495_s24 + $0x50] sm:$0xff] %v291_v61  ;;  %v295_v9 = vmax.f32 %v263_v62, 0.0  ;;  %v229_v12 = vmul.f32 %v462_v0, %v189_v58  ;;  %324 = vst [vmem:[%s495_s24 + $0x58] sm:$0xff] %v292_v4  ;;  %v230_v15 = vmul.f32 %v462_v0, %v190_v63  ;;  %v231_v16 = vmul.f32 %v462_v0, %v191_v2 }
  0x1f   : > { %325 = vst [vmem:[%s495_s24 + $0x60] sm:$0xff] %v293_v5  ;;  %326 = vst [vmem:[%s495_s24 + $0x68] sm:$0xff] %v294_v6  ;;  %v296_v14 = vmax.f32 %v264_v7, 0.0  ;;  %v232_v17 = vmul.f32 %v462_v0, %v192_v3  ;;  %v265_v18 = vadd.f32 %v472_v1, %v227_v10  ;;  %v266_v19 = vadd.f32 %v472_v1, %v228_v11 }
  0x20   : > { %327 = vst [vmem:[%s495_s24 + $0x70] sm:$0xff] %v295_v9  ;;  %v267_v20 = vadd.f32 %v472_v1, %v229_v12  ;;  %v233_v21 = vmul.f32 %v462_v0, %v193_v8  ;;  %v268_v22 = vadd.f32 %v472_v1, %v230_v15  ;;  %v269_v23 = vadd.f32 %v472_v1, %v231_v16 }
  0x21   : > { %328 = vst [vmem:[%s495_s24 + $0x78] sm:$0xff] %v296_v14  ;;  %v270_v24 = vadd.f32 %v472_v1, %v232_v17  ;;  %v234_v25 = vmul.f32 %v462_v0, %v194_v13  ;;  %v297_v29 = vmax.f32 %v265_v18, 0.0  ;;  %v298_v30 = vmax.f32 %v266_v19, 0.0 }
  0x22   : > { %v299_v31 = vmax.f32 %v267_v20, 0.0  ;;  %v271_v32 = vadd.f32 %v472_v1, %v233_v21  ;;  %v300_v36 = vmax.f32 %v268_v22, 0.0  ;;  %v301_v37 = vmax.f32 %v269_v23, 0.0 }
  0x23   : > { %v302_v38 = vmax.f32 %v270_v24, 0.0  ;;  %v272_v39 = vadd.f32 %v472_v1, %v234_v25  ;;  %329 = vst [vmem:[%s495_s24 + $0x80] sm:$0xff] %v297_v29  ;;  %330 = vst [vmem:[%s495_s24 + $0x88] sm:$0xff] %v298_v30  ;;  %v235_v42 = vmul.f32 %v462_v0, %v195_v26  ;;  %v236_v43 = vmul.f32 %v462_v0, %v196_v27 }
  0x24   : > { %331 = vst [vmem:[%s495_s24 + $0x90] sm:$0xff] %v299_v31  ;;  %v303_v41 = vmax.f32 %v271_v32, 0.0  ;;  %v237_v44 = vmul.f32 %v462_v0, %v197_v28  ;;  %332 = vst [vmem:[%s495_s24 + $0x98] sm:$0xff] %v300_v36  ;;  %v238_v47 = vmul.f32 %v462_v0, %v198_v33  ;;  %v239_v48 = vmul.f32 %v462_v0, %v199_v34 }
  0x25   : > { %333 = vst [vmem:[%s495_s24 + $0xa0] sm:$0xff] %v301_v37  ;;  %334 = vst [vmem:[%s495_s24 + $0xa8] sm:$0xff] %v302_v38  ;;  %v304_v46 = vmax.f32 %v272_v39, 0.0  ;;  %v240_v49 = vmul.f32 %v462_v0, %v200_v35  ;;  %v273_v50 = vadd.f32 %v472_v1, %v235_v42  ;;  %v274_v51 = vadd.f32 %v472_v1, %v236_v43 }
  0x26   : > { %335 = vst [vmem:[%s495_s24 + $0xb0] sm:$0xff] %v303_v41  ;;  %v275_v52 = vadd.f32 %v472_v1, %v237_v44  ;;  %v241_v53 = vmul.f32 %v462_v0, %v201_v40  ;;  %v276_v54 = vadd.f32 %v472_v1, %v238_v47  ;;  %v277_v55 = vadd.f32 %v472_v1, %v239_v48 }
  0x27   : > { %336 = vst [vmem:[%s495_s24 + $0xb8] sm:$0xff] %v304_v46  ;;  %v278_v56 = vadd.f32 %v472_v1, %v240_v49  ;;  %v242_v57 = vmul.f32 %v462_v0, %v202_v45  ;;  %v305_v58 = vmax.f32 %v273_v50, 0.0  ;;  %v306_v59 = vmax.f32 %v274_v51, 0.0 }
  0x28   : > { %v307_v60 = vmax.f32 %v275_v52, 0.0  ;;  %v279_v61 = vadd.f32 %v472_v1, %v241_v53  ;;  %v308_v62 = vmax.f32 %v276_v54, 0.0  ;;  %v309_v63 = vmax.f32 %v277_v55, 0.0 }
  0x29   : > { %v310_v2 = vmax.f32 %v278_v56, 0.0  ;;  %v280_v3 = vadd.f32 %v472_v1, %v242_v57  ;;  %337 = vst [vmem:[%s495_s24 + $0xc0] sm:$0xff] %v305_v58  ;;  %338 = vst [vmem:[%s495_s24 + $0xc8] sm:$0xff] %v306_v59 }
  0x2a   : > { %339 = vst [vmem:[%s495_s24 + $0xd0] sm:$0xff] %v307_v60  ;;  %v311_v4 = vmax.f32 %v279_v61, 0.0  ;;  %340 = vst [vmem:[%s495_s24 + $0xd8] sm:$0xff] %v308_v62 }
  0x2b   : > { %341 = vst [vmem:[%s495_s24 + $0xe0] sm:$0xff] %v309_v63  ;;  %342 = vst [vmem:[%s495_s24 + $0xe8] sm:$0xff] %v310_v2  ;;  %v312_v0 = vmax.f32 %v280_v3, 0.0 }
  0x2c   : > { %343 = vst [vmem:[%s495_s24 + $0xf0] sm:$0xff] %v311_v4 }
  0x2d   : > { %344 = vst [vmem:[%s495_s24 + $0xf8] sm:$0xff] %v312_v0 }
  0x2e PF: > { %s13_s12 = sadd.s32 1, %s429_s12  }
  0x2f   : > { %p10_p4 = scmp.ge.s32.totalorder %s13_s12, 4  }
  0x31   :  { %12 = sbr.rel (!%p10_p4) target bundleno = 1 (0x1), region = 62 }

// kernel: single_conv_forward.2
= control target key start
LH: loop header
LB: loop body
LE: loop exit
PB: predicated region body
PF: predicated region fallthrough
CT: control target
= control target key end

     0   :  { %s3362_s15 = smov 0   ;;  %s4896_s0 = inlined_call_operand.vmem [shape: f32[2,18,18,128], index: 0, kind: input, shape index: {}]   ;;  %s4897_s1 = inlined_call_operand.vmem [shape: f32[1152,128], index: 1, kind: input, shape index: {}]   ;;  %s4898_s2 = inlined_call_operand.vmem [shape: f32[2,16,16,128], index: 2, kind: output, shape index: {0}]   ;;  %s4899_s3 = inlined_call_operand.vmem [shape: f32[2,1,128], index: 3, kind: output, shape index: {1}]   ;;  %s4900_s4 = inlined_call_operand.vmem [shape: f32[2,1,128], index: 4, kind: output, shape index: {2}]  }
   0x1 LB: > { %s2595_s16 = sadd.s32 4294967295, %s3334_s15   ;;  %p2599_p0 = scmp.ge.s32.totalorder %s3334_s15, 1  ;;  %s3334_s15 = sphi %s3362_s15, %s15_s15  }
   0x2   : > { %p167_p1 = scmp.lt.s32.totalorder %s3334_s15, 3 }
   0x4   : > { %p168_p2 = pnand %p2599_p0, %p167_p1 }
   0x6   : > { %171 = sbr.rel (%p168_p2) target bundleno = 645 (0x285), region = 28 }
   0xd   : > { %v1081_v0 = vld [vmem:[%s4897_s1] sm:$0xff]  ;;  %v1082_v1 = vld [vmem:[%s4897_s1 + $0x8] sm:$0xff]  ;;  %v4901_v3 = vmov 0.0|0.0   ;;  %v1083_v6 = vld [vmem:[%s4897_s1 + $0x10] sm:$0xff]  ;;  %p199_p3 = scmp.lt.s32.totalorder %s2595_s16, 1 }
   0xe   : > { %v1113_v2 = vld [vmem:[%s4897_s1 + $0x100] sm:$0xff]  ;;  %2926 = vmatprep.subr.bf16.mxu1 %v4901_v3  ;;  %2974 = vmatprep.subr.bf16.mxu0 %v4901_v3  ;;  %v2927_v4 = vpack.c.bf16 %v1082_v1, %v1081_v0  ;;  %v1114_v5 = vld [vmem:[%s4897_s1 + $0x108] sm:$0xff]  ;;  %v1084_v7 = vld [vmem:[%s4897_s1 + $0x18] sm:$0xff] }
   0xf   : > { %v2975_v8 = vpack.c.bf16 %v1114_v5, %v1113_v2  ;;  %v1115_v9 = vld [vmem:[%s4897_s1 + $0x110] sm:$0xff]  ;;  %v1116_v10 = vld [vmem:[%s4897_s1 + $0x118] sm:$0xff]  ;;  %v2930_v11 = vpack.c.bf16 %v1084_v7, %v1083_v6  ;;  %v1085_v13 = vld [vmem:[%s4897_s1 + $0x20] sm:$0xff]  ;;  %s5043_s16 = smov (!%p199_p3, %s2595_s16), 1 }
  0x10   : > { %2928 = vmatpush1.bf16.msra.mxu1 %v2927_v4  ;;  %v2978_v12 = vpack.c.bf16 %v1116_v10, %v1115_v9  ;;  %v1086_v14 = vld [vmem:[%s4897_s1 + $0x28] sm:$0xff]  ;;  %v1117_v15 = vld [vmem:[%s4897_s1 + $0x120] sm:$0xff]  ;;  %v1087_v19 = vld [vmem:[%s4897_s1 + $0x30] sm:$0xff]  ;;  %s3318_s7 = smul.u32 432, %s5043_s16  ;;  %s211_s10 = scalar_lea.vmem %s4899_s3, %s5043_s16 }
  0x11   : > { %2976 = vmatpush1.bf16.msra.mxu0 %v2975_v8  ;;  %2929 = vmatprep.subr.bf16.mxu1 %v4901_v3  ;;  %v1118_v16 = vld [vmem:[%s4897_s1 + $0x128] sm:$0xff]  ;;  %v2933_v17 = vpack.c.bf16 %v1086_v14, %v1085_v13  ;;  %v1088_v20 = vld [vmem:[%s4897_s1 + $0x38] sm:$0xff]  ;;  %v1119_v21 = vld [vmem:[%s4897_s1 + $0x130] sm:$0xff]  ;;  %s214_s13 = scalar_lea.vmem %s4900_s4, %s5043_s16 }
  0x12   : > { %2977 = vmatprep.subr.bf16.mxu0 %v4901_v3  ;;  %v2981_v18 = vpack.c.bf16 %v1118_v16, %v1117_v15  ;;  %v1120_v22 = vld [vmem:[%s4897_s1 + $0x138] sm:$0xff]  ;;  %v2936_v23 = vpack.c.bf16 %v1088_v20, %v1087_v19  ;;  %v1089_v25 = vld [vmem:[%s4897_s1 + $0x40] sm:$0xff]  ;;  %v1090_v26 = vld [vmem:[%s4897_s1 + $0x48] sm:$0xff]  ;;  %s3462_s20 = scalar_lea.vmem %s4896_s0, %s3318_s7 }
  0x13   : > { %v2984_v24 = vpack.c.bf16 %v1120_v22, %v1119_v21  ;;  %v1121_v27 = vld [vmem:[%s4897_s1 + $0x140] sm:$0xff]  ;;  %v1122_v28 = vld [vmem:[%s4897_s1 + $0x148] sm:$0xff]  ;;  %v2939_v29 = vpack.c.bf16 %v1090_v26, %v1089_v25  ;;  %v1091_v31 = vld [vmem:[%s4897_s1 + $0x50] sm:$0xff] }
  0x14   : > { %2931 = vmatpush1.bf16.msra.mxu1 %v2930_v11  ;;  %v2987_v30 = vpack.c.bf16 %v1122_v28, %v1121_v27  ;;  %v1092_v32 = vld [vmem:[%s4897_s1 + $0x58] sm:$0xff]  ;;  %v1123_v33 = vld [vmem:[%s4897_s1 + $0x150] sm:$0xff]  ;;  %v1093_v37 = vld [vmem:[%s4897_s1 + $0x60] sm:$0xff] }
  0x15   : > { %2979 = vmatpush1.bf16.msra.mxu0 %v2978_v12  ;;  %2932 = vmatprep.subr.bf16.mxu1 %v4901_v3  ;;  %v1124_v34 = vld [vmem:[%s4897_s1 + $0x158] sm:$0xff]  ;;  %v2942_v35 = vpack.c.bf16 %v1092_v32, %v1091_v31  ;;  %v1094_v38 = vld [vmem:[%s4897_s1 + $0x68] sm:$0xff]  ;;  %v1125_v39 = vld [vmem:[%s4897_s1 + $0x160] sm:$0xff] }
  0x16   : > { %2980 = vmatprep.subr.bf16.mxu0 %v4901_v3  ;;  %v2990_v36 = vpack.c.bf16 %v1124_v34, %v1123_v33  ;;  %v1126_v40 = vld [vmem:[%s4897_s1 + $0x168] sm:$0xff]  ;;  %v3480_v42 = vld [vmem:[%s3462_s20 + $0x18] sm:$0xff]  ;;  %v2945_v43 = vpack.c.bf16 %v1094_v38, %v1093_v37  ;;  %v1095_v45 = vld [vmem:[%s4897_s1 + $0x70] sm:$0xff] }
  0x17   : > { %v279_v41 = vld [vmem:[%s3462_s20 + $0x1] sm:$0xff]  ;;  %1514 = vmatprep.mubr.f32.mxu0 %v3480_v42  ;;  %v2993_v44 = vpack.c.bf16 %v1126_v40, %v1125_v39  ;;  %v1096_v46 = vld [vmem:[%s4897_s1 + $0x78] sm:$0xff]  ;;  %v1127_v47 = vld [vmem:[%s4897_s1 + $0x170] sm:$0xff] }
  0x18   : > { %2934 = vmatpush1.bf16.msra.mxu1 %v2933_v17  ;;  %1289 = vmatprep.mubr.f32.mxu1 %v279_v41  ;;  %v1128_v48 = vld [vmem:[%s4897_s1 + $0x178] sm:$0xff]  ;;  %v2948_v49 = vpack.c.bf16 %v1096_v46, %v1095_v45  ;;  %v1097_v51 = vld [vmem:[%s4897_s1 + $0x80] sm:$0xff]  ;;  %v1098_v52 = vld [vmem:[%s4897_s1 + $0x88] sm:$0xff] }
  0x19   : > { %2982 = vmatpush1.bf16.msra.mxu0 %v2981_v18  ;;  %2935 = vmatprep.subr.bf16.mxu1 %v4901_v3  ;;  %v2996_v50 = vpack.c.bf16 %v1128_v48, %v1127_v47  ;;  %v1129_v53 = vld [vmem:[%s4897_s1 + $0x180] sm:$0xff]  ;;  %v1130_v54 = vld [vmem:[%s4897_s1 + $0x188] sm:$0xff]  ;;  %v2951_v55 = vpack.c.bf16 %v1098_v52, %v1097_v51  ;;  %v1099_v57 = vld [vmem:[%s4897_s1 + $0x90] sm:$0xff] }
  0x1a   : > { %2983 = vmatprep.subr.bf16.mxu0 %v4901_v3  ;;  %v2999_v56 = vpack.c.bf16 %v1130_v54, %v1129_v53  ;;  %v1100_v58 = vld [vmem:[%s4897_s1 + $0x98] sm:$0xff]  ;;  %v1131_v59 = vld [vmem:[%s4897_s1 + $0x190] sm:$0xff]  ;;  %v1101_v63 = vld [vmem:[%s4897_s1 + $0xa0] sm:$0xff] }
  0x1b   : > { %v1132_v60 = vld [vmem:[%s4897_s1 + $0x198] sm:$0xff]  ;;  %v2954_v61 = vpack.c.bf16 %v1100_v58, %v1099_v57  ;;  %v1102_v0 = vld [vmem:[%s4897_s1 + $0xa8] sm:$0xff]  ;;  %v1133_v1 = vld [vmem:[%s4897_s1 + $0x1a0] sm:$0xff] }
  0x1c   : > { %2937 = vmatpush1.bf16.msra.mxu1 %v2936_v23  ;;  %v3002_v62 = vpack.c.bf16 %v1132_v60, %v1131_v59  ;;  %v1134_v2 = vld [vmem:[%s4897_s1 + $0x1a8] sm:$0xff]  ;;  %v2957_v4 = vpack.c.bf16 %v1102_v0, %v1101_v63  ;;  %v1103_v6 = vld [vmem:[%s4897_s1 + $0xb0] sm:$0xff]  ;;  %v1104_v7 = vld [vmem:[%s4897_s1 + $0xb8] sm:$0xff] }
  0x1d   : > { %2985 = vmatpush1.bf16.msra.mxu0 %v2984_v24  ;;  %2938 = vmatprep.subr.bf16.mxu1 %v4901_v3  ;;  %v3005_v5 = vpack.c.bf16 %v1134_v2, %v1133_v1  ;;  %v1135_v8 = vld [vmem:[%s4897_s1 + $0x1b0] sm:$0xff]  ;;  %v1136_v9 = vld [vmem:[%s4897_s1 + $0x1b8] sm:$0xff]  ;;  %v2960_v10 = vpack.c.bf16 %v1104_v7, %v1103_v6  ;;  %v1105_v12 = vld [vmem:[%s4897_s1 + $0xc0] sm:$0xff] }
  0x1e   : > { %2986 = vmatprep.subr.bf16.mxu0 %v4901_v3  ;;  %v3008_v11 = vpack.c.bf16 %v1136_v9, %v1135_v8  ;;  %v1106_v13 = vld [vmem:[%s4897_s1 + $0xc8] sm:$0xff]  ;;  %v1137_v14 = vld [vmem:[%s4897_s1 + $0x1c0] sm:$0xff]  ;;  %v1107_v18 = vld [vmem:[%s4897_s1 + $0xd0] sm:$0xff] }
  0x1f   : > { %v1138_v15 = vld [vmem:[%s4897_s1 + $0x1c8] sm:$0xff]  ;;  %v2963_v16 = vpack.c.bf16 %v1106_v13, %v1105_v12  ;;  %v1108_v19 = vld [vmem:[%s4897_s1 + $0xd8] sm:$0xff]  ;;  %v1139_v20 = vld [vmem:[%s4897_s1 + $0x1d0] sm:$0xff] }
  0x20   : > { %2940 = vmatpush1.bf16.msra.mxu1 %v2939_v29  ;;  %v3011_v17 = vpack.c.bf16 %v1138_v15, %v1137_v14  ;;  %v1140_v21 = vld [vmem:[%s4897_s1 + $0x1d8] sm:$0xff]  ;;  %v2966_v22 = vpack.c.bf16 %v1108_v19, %v1107_v18  ;;  %v1109_v24 = vld [vmem:[%s4897_s1 + $0xe0] sm:$0xff]  ;;  %v1110_v25 = vld [vmem:[%s4897_s1 + $0xe8] sm:$0xff] }
  0x21   : > { %2988 = vmatpush1.bf16.msra.mxu0 %v2987_v30  ;;  %2941 = vmatprep.subr.bf16.mxu1 %v4901_v3  ;;  %v3014_v23 = vpack.c.bf16 %v1140_v21, %v1139_v20  ;;  %v1141_v26 = vld [vmem:[%s4897_s1 + $0x1e0] sm:$0xff]  ;;  %v1142_v27 = vld [vmem:[%s4897_s1 + $0x1e8] sm:$0xff]  ;;  %v2969_v28 = vpack.c.bf16 %v1110_v25, %v1109_v24  ;;  %v1111_v30 = vld [vmem:[%s4897_s1 + $0xf0] sm:$0xff] }
  0x22   : > { %2989 = vmatprep.subr.bf16.mxu0 %v4901_v3  ;;  %v3017_v29 = vpack.c.bf16 %v1142_v27, %v1141_v26  ;;  %v1112_v31 = vld [vmem:[%s4897_s1 + $0xf8] sm:$0xff]  ;;  %v1143_v32 = vld [vmem:[%s4897_s1 + $0x1f0] sm:$0xff]  ;;  %v1146_v37 = vld [vmem:[%s4897_s1 + $0x208] sm:$0xff] }
  0x23   : > { %v1144_v33 = vld [vmem:[%s4897_s1 + $0x1f8] sm:$0xff]  ;;  %v2972_v34 = vpack.c.bf16 %v1112_v31, %v1111_v30  ;;  %v1177_v38 = vld [vmem:[%s4897_s1 + $0x300] sm:$0xff]  ;;  %v1178_v39 = vld [vmem:[%s4897_s1 + $0x308] sm:$0xff] }
  0x24   : > { %2943 = vmatpush1.bf16.msra.mxu1 %v2942_v35  ;;  %v3020_v35 = vpack.c.bf16 %v1144_v33, %v1143_v32  ;;  %v215_v40 = vld [vmem:[%s3462_s20] sm:$0xff]  ;;  %v1147_v46 = vld [vmem:[%s4897_s1 + $0x210] sm:$0xff]  ;;  %v1148_v47 = vld [vmem:[%s4897_s1 + $0x218] sm:$0xff]  ;;  %v3635_v48 = vpack.c.bf16 %v1178_v39, %v1177_v38 }
  0x25   : > { %2991 = vmatpush1.bf16.msra.mxu0 %v2990_v36  ;;  %2944 = vmatprep.subr.bf16.mxu1 %v4901_v3  ;;  %v1145_v36 = vld [vmem:[%s4897_s1 + $0x200] sm:$0xff]  ;;  %v216_v51 = vld [vmem:[%s3462_s20 + $0x8] sm:$0xff]  ;;  %v3026_v54 = vpack.c.bf16 %v1148_v47, %v1147_v46  ;;  %v2606_v0 = vld [vmem:[%s3462_s20 + $0x38] sm:$0xff] }
  0x26   : > { %2992 = vmatprep.subr.bf16.mxu0 %v4901_v3  ;;  %v343_v41 = vld [vmem:[%s3462_s20 + $0x2] sm:$0xff]  ;;  %v344_v52 = vld [vmem:[%s3462_s20 + $0xa] sm:$0xff]  ;;  %v3646_v53 = vld [vmem:[%s3462_s20 + $0x19] sm:$0xff] }
  0x27   : > { %v2604_v45 = vld [vmem:[%s3462_s20 + $0x20] sm:$0xff]  ;;  %v1150_v57 = vld [vmem:[%s4897_s1 + $0x228] sm:$0xff]  ;;  %v1151_v1 = vld [vmem:[%s4897_s1 + $0x230] sm:$0xff] }
  0x28   : > { %2946 = vmatpush1.bf16.msra.mxu1 %v2945_v43  ;;  %v3023_v43 = vpack.c.bf16 %v1146_v37, %v1145_v36  ;;  %v1181_v59 = vld [vmem:[%s4897_s1 + $0x320] sm:$0xff]  ;;  %v1182_v60 = vld [vmem:[%s4897_s1 + $0x328] sm:$0xff]  ;;  %v1152_v2 = vld [vmem:[%s4897_s1 + $0x238] sm:$0xff] }
  0x29   : > { %2994 = vmatpush1.bf16.msra.mxu0 %v2993_v44  ;;  %2947 = vmatprep.subr.bf16.mxu1 %v4901_v3  ;;  %v280_v44 = vld [vmem:[%s3462_s20 + $0x9] sm:$0xff]  ;;  %v1184_v6 = vld [vmem:[%s4897_s1 + $0x338] sm:$0xff]  ;;  %v1185_v13 = vld [vmem:[%s4897_s1 + $0x340] sm:$0xff] }
  0x2a   : > { %2995 = vmatprep.subr.bf16.mxu0 %v4901_v3  ;;  %v3695_v7 = vld [vmem:[%s3462_s20 + $0x22] sm:$0xff]  ;;  %v3698_v8 = vld [vmem:[%s3462_s20 + $0x31] sm:$0xff]  ;;  %v3747_v24 = vld [vmem:[%s3462_s20 + $0x3a] sm:$0xff] }
  0x2b   : > { %v2607_v9 = vld [vmem:[%s3462_s20 + $0x48] sm:$0xff]  ;;  %v3721_v15 = vld [vmem:[%s3462_s20 + $0x32] sm:$0xff]  ;;  %v2609_v27 = vld [vmem:[%s3462_s20 + $0x60] sm:$0xff] }
  0x2c   : > { %2949 = vmatpush1.bf16.msra.mxu1 %v2948_v49  ;;  %v1179_v49 = vld [vmem:[%s4897_s1 + $0x310] sm:$0xff]  ;;  %v1186_v14 = vld [vmem:[%s4897_s1 + $0x348] sm:$0xff]  ;;  %v1156_v20 = vld [vmem:[%s4897_s1 + $0x258] sm:$0xff] }
  0x2d   : > { %2997 = vmatpush1.bf16.msra.mxu0 %v2996_v50  ;;  %2950 = vmatprep.subr.bf16.mxu1 %v4901_v3  ;;  %v1180_v50 = vld [vmem:[%s4897_s1 + $0x318] sm:$0xff]  ;;  %v2608_v18 = vld [vmem:[%s3462_s20 + $0x50] sm:$0xff]  ;;  %v3735_v21 = vpack.c.bf16 %v1186_v14, %v1185_v13  ;;  %v1189_v31 = vld [vmem:[%s4897_s1 + $0x360] sm:$0xff] }
  0x2e   : > { %2998 = vmatprep.subr.bf16.mxu0 %v4901_v3  ;;  %v3657_v58 = vpack.c.bf16 %v1180_v50, %v1179_v49  ;;  %v1155_v19 = vld [vmem:[%s4897_s1 + $0x250] sm:$0xff]  ;;  %v1190_v32 = vld [vmem:[%s4897_s1 + $0x368] sm:$0xff]  ;;  %v1160_v38 = vld [vmem:[%s4897_s1 + $0x278] sm:$0xff] }
  0x2f   : > { %v3750_v25 = vld [vmem:[%s3462_s20 + $0x49] sm:$0xff]  ;;  %v3038_v26 = vpack.c.bf16 %v1156_v20, %v1155_v19  ;;  %v3787_v39 = vpack.c.bf16 %v1190_v32, %v1189_v31  ;;  %v2611_v46 = vld [vmem:[%s3462_s20 + $0x78] sm:$0xff]  ;;  %v1161_v47 = vld [vmem:[%s4897_s1 + $0x280] sm:$0xff] }
  0x30   : > { %2952 = vmatpush1.bf16.msra.mxu1 %v2951_v55  ;;  %v2605_v55 = vld [vmem:[%s3462_s20 + $0x30] sm:$0xff]  ;;  %v2610_v36 = vld [vmem:[%s3462_s20 + $0x68] sm:$0xff]  ;;  %v1197_v13 = vld [vmem:[%s4897_s1 + $0x3a0] sm:$0xff] }
  0x31   : > { %3000 = vmatpush1.bf16.msra.mxu0 %v2999_v56  ;;  %2953 = vmatprep.subr.bf16.mxu1 %v4901_v3  ;;  %v1149_v56 = vld [vmem:[%s4897_s1 + $0x220] sm:$0xff]  ;;  %v3773_v33 = vld [vmem:[%s3462_s20 + $0x4a] sm:$0xff]  ;;  %v3886_v20 = vld [vmem:[%s3462_s20 + $0x98] sm:$0xff] }
  0x32   : > { %3001 = vmatprep.subr.bf16.mxu0 %v4901_v3  ;;  %v3029_v63 = vpack.c.bf16 %v1150_v57, %v1149_v56  ;;  %v1159_v37 = vld [vmem:[%s4897_s1 + $0x270] sm:$0xff]  ;;  %v1162_v49 = vld [vmem:[%s4897_s1 + $0x288] sm:$0xff]  ;;  %v2612_v57 = vld [vmem:[%s3462_s20 + $0x80] sm:$0xff] }
  0x33   : > { %v3047_v56 = vpack.c.bf16 %v1162_v49, %v1161_v47  ;;  %v1198_v14 = vld [vmem:[%s4897_s1 + $0x3a8] sm:$0xff]  ;;  %v3912_v31 = vld [vmem:[%s3462_s20 + $0x91] sm:$0xff] }
  0x34   : > { %2955 = vmatpush1.bf16.msra.mxu1 %v2954_v61  ;;  %v3668_v61 = vld [vmem:[%s3462_s20 + $0x1a] sm:$0xff]  ;;  %v3944_v49 = vld [vmem:[%s3462_s20 + $0xb0] sm:$0xff] }
  0x35   : > { %3003 = vmatpush1.bf16.msra.mxu0 %v3002_v62  ;;  %2956 = vmatprep.subr.bf16.mxu1 %v4901_v3  ;;  %v3671_v62 = vld [vmem:[%s3462_s20 + $0x21] sm:$0xff] }
  0x36   : > { %3004 = vmatprep.subr.bf16.mxu0 %v4901_v3 }
  0x38   : > { %2958 = vmatpush1.bf16.msra.mxu1 %v2957_v4  ;;  %v3682_v4 = vpack.c.bf16 %v1182_v60, %v1181_v59  ;;  %v1163_v59 = vld [vmem:[%s4897_s1 + $0x290] sm:$0xff]  ;;  %v1164_v60 = vld [vmem:[%s4897_s1 + $0x298] sm:$0xff] }
  0x39   : > { %3006 = vmatpush1.bf16.msra.mxu0 %v3005_v5  ;;  %2959 = vmatprep.subr.bf16.mxu1 %v4901_v3  ;;  %v1183_v5 = vld [vmem:[%s4897_s1 + $0x330] sm:$0xff] }
  0x3a   : > { %3007 = vmatprep.subr.bf16.mxu0 %v4901_v3  ;;  %v3709_v12 = vpack.c.bf16 %v1184_v6, %v1183_v5  ;;  %v3854_v5 = vld [vmem:[%s3462_s20 + $0x79] sm:$0xff]  ;;  %v3050_v6 = vpack.c.bf16 %v1164_v60, %v1163_v59 }
  0x3b   : > { %v1204_v59 = vld [vmem:[%s4897_s1 + $0x3d8] sm:$0xff] }
  0x3c   : > { %2961 = vmatpush1.bf16.msra.mxu1 %v2960_v10  ;;  %v1153_v10 = vld [vmem:[%s4897_s1 + $0x240] sm:$0xff] }
  0x3d   : > { %3009 = vmatpush1.bf16.msra.mxu0 %v3008_v11  ;;  %2962 = vmatprep.subr.bf16.mxu1 %v4901_v3  ;;  %v1154_v11 = vld [vmem:[%s4897_s1 + $0x248] sm:$0xff]  ;;  %v3968_v60 = vld [vmem:[%s3462_s20 + $0x9a] sm:$0xff] }
  0x3e   : > { %3010 = vmatprep.subr.bf16.mxu0 %v4901_v3  ;;  %4964 = vst [vmem:[#allocation6_spill] sm:$0xff] %v3968_v60 }
  0x40   : > { %2964 = vmatpush1.bf16.msra.mxu1 %v2963_v16  ;;  %v3724_v16 = vld [vmem:[%s3462_s20 + $0x39] sm:$0xff] }
  0x41   : > { %3012 = vmatpush1.bf16.msra.mxu0 %v3011_v17  ;;  %2965 = vmatprep.subr.bf16.mxu1 %v4901_v3  ;;  %v3035_v17 = vpack.c.bf16 %v1154_v11, %v1153_v10  ;;  %v1166_v10 = vld [vmem:[%s4897_s1 + $0x2a8] sm:$0xff] }
  0x42   : > { %3013 = vmatprep.subr.bf16.mxu0 %v4901_v3 }
  0x44   : > { %2967 = vmatpush1.bf16.msra.mxu1 %v2966_v22  ;;  %v1187_v22 = vld [vmem:[%s4897_s1 + $0x350] sm:$0xff] }
  0x45   : > { %3015 = vmatpush1.bf16.msra.mxu0 %v3014_v23  ;;  %2968 = vmatprep.subr.bf16.mxu1 %v4901_v3  ;;  %v1188_v23 = vld [vmem:[%s4897_s1 + $0x358] sm:$0xff] }
  0x46   : > { %3016 = vmatprep.subr.bf16.mxu0 %v4901_v3  ;;  %v3761_v30 = vpack.c.bf16 %v1188_v23, %v1187_v22  ;;  %v1167_v22 = vld [vmem:[%s4897_s1 + $0x2b0] sm:$0xff]  ;;  %v1168_v23 = vld [vmem:[%s4897_s1 + $0x2b8] sm:$0xff] }
  0x47   : > { %v3056_v32 = vpack.c.bf16 %v1168_v23, %v1167_v22  ;;  %v3998_v22 = vld [vmem:[%s3462_s20 + $0xaa] sm:$0xff] }
  0x48   : > { %2970 = vmatpush1.bf16.msra.mxu1 %v2969_v28  ;;  %v1157_v28 = vld [vmem:[%s4897_s1 + $0x260] sm:$0xff]  ;;  %4966 = vst [vmem:[#allocation8_spill] sm:$0xff] %v3998_v22  ;;  %v4001_v23 = vld [vmem:[%s3462_s20 + $0xb1] sm:$0xff] }
  0x49   : > { %3018 = vmatpush1.bf16.msra.mxu0 %v3017_v29  ;;  %2971 = vmatprep.subr.bf16.mxu1 %v4901_v3  ;;  %v1158_v29 = vld [vmem:[%s4897_s1 + $0x268] sm:$0xff] }
  0x4a   : > { %3019 = vmatprep.subr.bf16.mxu0 %v4901_v3 }
  0x4c   : > { %2973 = vmatpush1.bf16.msra.mxu1 %v2972_v34  ;;  %v3776_v34 = vld [vmem:[%s3462_s20 + $0x51] sm:$0xff] }
  0x4d   : > { %3021 = vmatpush1.bf16.msra.mxu0 %v3020_v35  ;;  %3150 = vmatprep.subr.bf16.mxu1 %v4901_v3  ;;  %v3041_v35 = vpack.c.bf16 %v1158_v29, %v1157_v28  ;;  %v1200_v28 = vld [vmem:[%s4897_s1 + $0x3b8] sm:$0xff]  ;;  %v3909_v29 = vld [vmem:[%s3462_s20 + $0x82] sm:$0xff] }
  0x4e   : > { %3022 = vmatprep.subr.bf16.mxu0 %v4901_v3 }
  0x4f   : > { %1290 = vmatmul.mubr.f32.vlgmr.msra.gmra.mrb[0].mxu1 %v215_v40  ;;  %v1191_v40 = vld [vmem:[%s4897_s1 + $0x370] sm:$0xff] }
  0x50   : > { %1515 = vmatmul.mubr.f32.vlgmr.msra.gmra.mrb[0].mxu0 %v343_v41  ;;  %1294 = vmatprep.mubr.f32.mxu1 %v280_v44  ;;  %v1192_v41 = vld [vmem:[%s4897_s1 + $0x378] sm:$0xff]  ;;  %v3802_v44 = vld [vmem:[%s3462_s20 + $0x61] sm:$0xff] }
  0x51   : > { %3024 = vmatpush1.bf16.msra.mxu0 %v3023_v43  ;;  %1519 = vmatprep.mubr.f32.mxu0 %v2604_v45  ;;  %v3799_v43 = vld [vmem:[%s3462_s20 + $0x52] sm:$0xff]  ;;  %v3813_v50 = vpack.c.bf16 %v1192_v41, %v1191_v40  ;;  %v1201_v40 = vld [vmem:[%s4897_s1 + $0x3c0] sm:$0xff]  ;;  %v1202_v41 = vld [vmem:[%s4897_s1 + $0x3c8] sm:$0xff] }
  0x52   : > { %3025 = vmatprep.subr.bf16.mxu0 %v4901_v3  ;;  %3166 = vmatpush1.bf16.msra.mxu1 %v3635_v48 }
  0x53   : > { %1295 = vmatmul.mubr.f32.gmra.mrb[2].mxu1 %v216_v51  ;;  %3151 = vmatprep.subr.bf16.mxu1 %v4901_v3  ;;  %v1193_v51 = vld [vmem:[%s4897_s1 + $0x380] sm:$0xff] }
  0x54   : > { %1520 = vmatmul.mubr.f32.gmra.mrb[2].mxu0 %v344_v52  ;;  %1299 = vmatprep.mubr.f32.mxu1 %v3646_v53  ;;  %v1194_v52 = vld [vmem:[%s4897_s1 + $0x388] sm:$0xff] }
  0x55   : > { %1524 = vmatprep.mubr.f32.mxu0 %v2605_v55  ;;  %3027 = vmatpush1.bf16.msra.mxu0 %v3026_v54  ;;  %v3825_v54 = vld [vmem:[%s3462_s20 + $0x62] sm:$0xff] }
  0x56   : > { %3028 = vmatprep.subr.bf16.mxu0 %v4901_v3  ;;  %3167 = vmatpush1.bf16.msra.mxu1 %v3657_v58 }
  0x57   : > { %1300 = vmatmul.mubr.f32.gmra.mrb[4].mxu1 %v3480_v42  ;;  %3152 = vmatprep.subr.bf16.mxu1 %v4901_v3  ;;  %v3032_v42 = vpack.c.bf16 %v1152_v2, %v1151_v1  ;;  %v1196_v1 = vld [vmem:[%s4897_s1 + $0x398] sm:$0xff]  ;;  %v3851_v2 = vld [vmem:[%s3462_s20 + $0x6a] sm:$0xff] }
  0x58   : > { %1525 = vmatmul.mubr.f32.gmra.mrb[4].mxu0 %v3668_v61  ;;  %1304 = vmatprep.mubr.f32.mxu1 %v3671_v62 }
  0x59   : > { %1529 = vmatprep.mubr.f32.mxu0 %v2606_v0  ;;  %3030 = vmatpush1.bf16.msra.mxu0 %v3029_v63  ;;  %v3839_v63 = vpack.c.bf16 %v1194_v52, %v1193_v51  ;;  %v1171_v51 = vld [vmem:[%s4897_s1 + $0x2d0] sm:$0xff]  ;;  %v1172_v52 = vld [vmem:[%s4897_s1 + $0x2d8] sm:$0xff] }
  0x5a   : > { %3031 = vmatprep.subr.bf16.mxu0 %v4901_v3  ;;  %3168 = vmatpush1.bf16.msra.mxu1 %v3682_v4 }
  0x5b   : > { %1305 = vmatmul.mubr.f32.gmra.mrb[6].mxu1 %v2604_v45  ;;  %3153 = vmatprep.subr.bf16.mxu1 %v4901_v3  ;;  %v3044_v45 = vpack.c.bf16 %v1160_v38, %v1159_v37  ;;  %v1170_v37 = vld [vmem:[%s4897_s1 + $0x2c8] sm:$0xff] }
  0x5c   : > { %1530 = vmatmul.mubr.f32.gmra.mrb[6].mxu0 %v3695_v7  ;;  %1309 = vmatprep.mubr.f32.mxu1 %v3698_v8 }
  0x5d   : > { %1534 = vmatprep.mubr.f32.mxu0 %v2607_v9  ;;  %3033 = vmatpush1.bf16.msra.mxu0 %v3032_v42  ;;  %v3857_v42 = vld [vmem:[%s3462_s20 + $0x90] sm:$0xff] }
  0x5e   : > { %3034 = vmatprep.subr.bf16.mxu0 %v4901_v3  ;;  %3169 = vmatpush1.bf16.msra.mxu1 %v3709_v12 }
  0x5f   : > { %1310 = vmatmul.mubr.f32.gmra.mrb[8].mxu1 %v2605_v55  ;;  %3154 = vmatprep.subr.bf16.mxu1 %v4901_v3  ;;  %v3828_v55 = vld [vmem:[%s3462_s20 + $0x69] sm:$0xff] }
  0x60   : > { %1535 = vmatmul.mubr.f32.gmra.mrb[8].mxu0 %v3721_v15  ;;  %1314 = vmatprep.mubr.f32.mxu1 %v3724_v16 }
  0x61   : > { %1539 = vmatprep.mubr.f32.mxu0 %v2608_v18  ;;  %3036 = vmatpush1.bf16.msra.mxu0 %v3035_v17  ;;  %v3880_v17 = vld [vmem:[%s3462_s20 + $0x7a] sm:$0xff] }
  0x62   : > { %3037 = vmatprep.subr.bf16.mxu0 %v4901_v3  ;;  %3170 = vmatpush1.bf16.msra.mxu1 %v3735_v21 }
  0x63   : > { %1315 = vmatmul.mubr.f32.gmra.mrb[10].mxu1 %v2606_v0  ;;  %3155 = vmatprep.subr.bf16.mxu1 %v4901_v3  ;;  %v1195_v0 = vld [vmem:[%s4897_s1 + $0x390] sm:$0xff] }
  0x64   : > { %1540 = vmatmul.mubr.f32.gmra.mrb[10].mxu0 %v3747_v24  ;;  %1319 = vmatprep.mubr.f32.mxu1 %v3750_v25  ;;  %v3867_v11 = vpack.c.bf16 %v1196_v1, %v1195_v0  ;;  %v3971_v0 = vld [vmem:[%s3462_s20 + $0xa9] sm:$0xff]  ;;  %v3062_v1 = vpack.c.bf16 %v1172_v52, %v1171_v51  ;;  %v4034_v52 = vld [vmem:[%s3462_s20 + $0xb2] sm:$0xff] }
  0x65   : > { %1544 = vmatprep.mubr.f32.mxu0 %v2609_v27  ;;  %3039 = vmatpush1.bf16.msra.mxu0 %v3038_v26  ;;  %v3896_v26 = vpack.c.bf16 %v1198_v14, %v1197_v13  ;;  %v1205_v14 = vld [vmem:[%s4897_s1 + $0x3e0] sm:$0xff]  ;;  %v1210_v51 = vld [vmem:[%s4897_s1 + $0x408] sm:$0xff]  ;;  %4968 = vst [vmem:[#allocation10_spill] sm:$0xff] %v4034_v52 }
  0x66   : > { %3040 = vmatprep.subr.bf16.mxu0 %v4901_v3  ;;  %3171 = vmatpush1.bf16.msra.mxu1 %v3761_v30 }
  0x67   : > { %1320 = vmatmul.mubr.f32.gmra.mrb[12].mxu1 %v2607_v9  ;;  %3156 = vmatprep.subr.bf16.mxu1 %v4901_v3  ;;  %v1165_v9 = vld [vmem:[%s4897_s1 + $0x2a0] sm:$0xff]  ;;  %4961 = vst [vmem:[#allocation3_spill] sm:$0xff] %v3896_v26 }
  0x68   : > { %1545 = vmatmul.mubr.f32.gmra.mrb[12].mxu0 %v3773_v33  ;;  %1324 = vmatprep.mubr.f32.mxu1 %v3776_v34  ;;  %v3053_v19 = vpack.c.bf16 %v1166_v10, %v1165_v9  ;;  %v1173_v9 = vld [vmem:[%s4897_s1 + $0x2e0] sm:$0xff]  ;;  %v1174_v10 = vld [vmem:[%s4897_s1 + $0x2e8] sm:$0xff] }
  0x69   : > { %1549 = vmatprep.mubr.f32.mxu0 %v2610_v36  ;;  %3042 = vmatpush1.bf16.msra.mxu0 %v3041_v35  ;;  %v3915_v35 = vld [vmem:[%s3462_s20 + $0xa8] sm:$0xff] }
  0x6a   : > { %3043 = vmatprep.subr.bf16.mxu0 %v4901_v3  ;;  %3172 = vmatpush1.bf16.msra.mxu1 %v3787_v39 }
  0x6b   : > { %1325 = vmatmul.mubr.f32.gmra.mrb[14].mxu1 %v2608_v18  ;;  %3157 = vmatprep.subr.bf16.mxu1 %v4901_v3  ;;  %v3883_v18 = vld [vmem:[%s3462_s20 + $0x81] sm:$0xff] }
  0x6c   : > { %1550 = vmatmul.mubr.f32.gmra.mrb[14].mxu0 %v3799_v43  ;;  %1329 = vmatprep.mubr.f32.mxu1 %v3802_v44 }
  0x6d   : > { %1554 = vmatprep.mubr.f32.mxu0 %v2611_v46  ;;  %3045 = vmatpush1.bf16.msra.mxu0 %v3044_v45  ;;  %v3938_v45 = vld [vmem:[%s3462_s20 + $0x92] sm:$0xff] }
  0x6e   : > { %3046 = vmatprep.subr.bf16.mxu0 %v4901_v3  ;;  %3173 = vmatpush1.bf16.msra.mxu1 %v3813_v50 }
  0x6f   : > { %1330 = vmatmul.mubr.f32.gmra.mrb[16].mxu1 %v2609_v27  ;;  %3158 = vmatprep.subr.bf16.mxu1 %v4901_v3  ;;  %v1199_v27 = vld [vmem:[%s4897_s1 + $0x3b0] sm:$0xff] }
  0x70   : > { %1555 = vmatmul.mubr.f32.gmra.mrb[16].mxu0 %v3825_v54  ;;  %1334 = vmatprep.mubr.f32.mxu1 %v3828_v55  ;;  %v3925_v38 = vpack.c.bf16 %v1200_v28, %v1199_v27  ;;  %v3065_v27 = vpack.c.bf16 %v1174_v10, %v1173_v9  ;;  %v4004_v28 = vld [vmem:[%s3462_s20 + $0xc8] sm:$0xff] }
  0x71   : > { %1559 = vmatprep.mubr.f32.mxu0 %v2612_v57  ;;  %3048 = vmatpush1.bf16.msra.mxu0 %v3047_v56  ;;  %v3954_v56 = vpack.c.bf16 %v1202_v41, %v1201_v40  ;;  %v1207_v40 = vld [vmem:[%s4897_s1 + $0x3f0] sm:$0xff]  ;;  %v1208_v41 = vld [vmem:[%s4897_s1 + $0x3f8] sm:$0xff] }
  0x72   : > { %3049 = vmatprep.subr.bf16.mxu0 %v4901_v3  ;;  %3174 = vmatpush1.bf16.msra.mxu1 %v3839_v63  ;;  %4962 = vst [vmem:[#allocation4_spill] sm:$0xff] %v3925_v38  ;;  %v4044_v9 = vpack.c.bf16 %v1208_v41, %v1207_v40  ;;  %v4076_v40 = vld [vmem:[%s3462_s20 + $0xf0] sm:$0xff]  ;;  %v4083_v41 = vld [vmem:[%s3462_s20 + $0xda] sm:$0xff] }
  0x73   : > { %1335 = vmatmul.mubr.f32.gmra.mrb[18].mxu1 %v2610_v36  ;;  %3159 = vmatprep.subr.bf16.mxu1 %v4901_v3  ;;  %v1169_v36 = vld [vmem:[%s4897_s1 + $0x2c0] sm:$0xff]  ;;  %4963 = vst [vmem:[#allocation5_spill] sm:$0xff] %v3954_v56  ;;  %4972 = vst [vmem:[#allocation14_spill] sm:$0xff] %v4083_v41 }
  0x74   : > { %1560 = vmatmul.mubr.f32.gmra.mrb[18].mxu0 %v3851_v2  ;;  %1339 = vmatprep.mubr.f32.mxu1 %v3854_v5  ;;  %v3059_v47 = vpack.c.bf16 %v1170_v37, %v1169_v36  ;;  %v1176_v36 = vld [vmem:[%s4897_s1 + $0x2f8] sm:$0xff]  ;;  %4969 = vst [vmem:[#allocation11_spill] sm:$0xff] %v4044_v9 }
  0x75   : > { %1564 = vmatprep.mubr.f32.mxu0 %v3857_v42  ;;  %3051 = vmatpush1.bf16.msra.mxu0 %v3050_v6  ;;  %v3974_v6 = vld [vmem:[%s3462_s20 + $0xc0] sm:$0xff] }
  0x76   : > { %3052 = vmatprep.subr.bf16.mxu0 %v4901_v3  ;;  %3175 = vmatpush1.bf16.msra.mxu1 %v3867_v11 }
  0x77   : > { %1340 = vmatmul.mubr.f32.gmra.mrb[20].mxu1 %v2611_v46  ;;  %3160 = vmatprep.subr.bf16.mxu1 %v4901_v3  ;;  %v3941_v46 = vld [vmem:[%s3462_s20 + $0x99] sm:$0xff] }
  0x78   : > { %1565 = vmatmul.mubr.f32.gmra.mrb[20].mxu0 %v3880_v17  ;;  %1344 = vmatprep.mubr.f32.mxu1 %v3883_v18 }
  0x79   : > { %1569 = vmatprep.mubr.f32.mxu0 %v3886_v20  ;;  %3054 = vmatpush1.bf16.msra.mxu0 %v3053_v19  ;;  %v1206_v19 = vld [vmem:[%s4897_s1 + $0x3e8] sm:$0xff] }
  0x7a   : > { %3055 = vmatprep.subr.bf16.mxu0 %v4901_v3  ;;  %3176 = vmatpush1.bf16.msra.mxu1 %v3896_v26  ;;  %v4014_v37 = vpack.c.bf16 %v1206_v19, %v1205_v14  ;;  %v4054_v14 = vld [vmem:[%s3462_s20 + $0xc2] sm:$0xff] }
  0x7b   : > { %1345 = vmatmul.mubr.f32.gmra.mrb[22].mxu1 %v2612_v57  ;;  %3161 = vmatprep.subr.bf16.mxu1 %v4901_v3  ;;  %v1203_v57 = vld [vmem:[%s4897_s1 + $0x3d0] sm:$0xff]  ;;  %4970 = vst [vmem:[#allocation12_spill] sm:$0xff] %v4054_v14 }
  0x7c   : > { %1570 = vmatmul.mubr.f32.gmra.mrb[22].mxu0 %v3909_v29  ;;  %1349 = vmatprep.mubr.f32.mxu1 %v3912_v31  ;;  %v3984_v13 = vpack.c.bf16 %v1204_v59, %v1203_v57  ;;  %4967 = vst [vmem:[#allocation9_spill] sm:$0xff] %v4014_v37  ;;  %v4037_v57 = vld [vmem:[%s3462_s20 + $0xc1] sm:$0xff]  ;;  %v4057_v19 = vld [vmem:[%s3462_s20 + $0xc9] sm:$0xff] }
  0x7d   : > { %1574 = vmatprep.mubr.f32.mxu0 %v3915_v35  ;;  %3057 = vmatpush1.bf16.msra.mxu0 %v3056_v32  ;;  %v1175_v32 = vld [vmem:[%s4897_s1 + $0x2f0] sm:$0xff] }
  0x7e   : > { %3058 = vmatprep.subr.bf16.mxu0 %v4901_v3  ;;  %3177 = vmatpush1.bf16.msra.mxu1 %v3925_v38  ;;  %4965 = vst [vmem:[#allocation7_spill] sm:$0xff] %v3984_v13  ;;  %v3068_v59 = vpack.c.bf16 %v1176_v36, %v1175_v32  ;;  %v4070_v32 = vld [vmem:[%s3462_s20 + $0xca] sm:$0xff]  ;;  %v4073_v36 = vld [vmem:[%s3462_s20 + $0xd9] sm:$0xff]  ;;  %v4151_v38 = vld [vmem:[%s3462_s20 + $0x121] sm:$0xff] }
  0x7f   : > { %1350 = vmatmul.mubr.f32.gmra.mrb[24].mxu1 %v3857_v42  ;;  %3162 = vmatprep.subr.bf16.mxu1 %v4901_v3  ;;  %4971 = vst [vmem:[#allocation13_spill] sm:$0xff] %v4070_v32  ;;  %4981 = vst [vmem:[#allocation23_spill] sm:$0xff] %v4151_v38  ;;  %v4164_v26 = vld [vmem:[%s3462_s20 + $0x129] sm:$0xff] }
  0x80   : > { %1575 = vmatmul.mubr.f32.gmra.mrb[24].mxu0 %v3938_v45  ;;  %1354 = vmatprep.mubr.f32.mxu1 %v3941_v46  ;;  %4984 = vst [vmem:[#allocation26_spill] sm:$0xff] %v4164_v26 }
  0x81   : > { %1579 = vmatprep.mubr.f32.mxu0 %v3944_v49  ;;  %3060 = vmatpush1.bf16.msra.mxu0 %v3059_v47  ;;  %v1209_v47 = vld [vmem:[%s4897_s1 + $0x400] sm:$0xff] }
  0x82   : > { %3061 = vmatprep.subr.bf16.mxu0 %v4901_v3  ;;  %3178 = vmatpush1.bf16.msra.mxu1 %v3954_v56  ;;  %v4048_v10 = vpack.c.bf16 %v1210_v51, %v1209_v47  ;;  %v4086_v47 = vld [vmem:[%s3462_s20 + $0xe1] sm:$0xff]  ;;  %v4089_v51 = vld [vmem:[%s3462_s20 + $0xf8] sm:$0xff] }
  0x83   : > { %1355 = vmatmul.mubr.f32.gmra.mrb[26].mxu1 %v3886_v20  ;;  %3163 = vmatprep.subr.bf16.mxu1 %v4901_v3  ;;  %v4138_v56 = vld [vmem:[%s3462_s20 + $0x111] sm:$0xff] }
  0x84   : > { %1580 = vmatmul.mubr.f32.gmra.mrb[26].mxu0 %v3968_v60  ;;  %1359 = vmatprep.mubr.f32.mxu1 %v3971_v0  ;;  %v4167_v60 = vld [vmem:[%s3462_s20 + $0x140] sm:$0xff] }
  0x85   : > { %1584 = vmatprep.mubr.f32.mxu0 %v3974_v6  ;;  %3063 = vmatpush1.bf16.msra.mxu0 %v3062_v1  ;;  %v4040_v1 = vld [vmem:[%s3462_s20 + $0xd8] sm:$0xff]  ;;  %4985 = vst [vmem:[#allocation27_spill] sm:$0xff] %v4167_v60 }
  0x86   : > { %3064 = vmatprep.subr.bf16.mxu0 %v4901_v3  ;;  %3179 = vmatpush1.bf16.msra.mxu1 %v3984_v13  ;;  %v4125_v13 = vld [vmem:[%s3462_s20 + $0x109] sm:$0xff] }
  0x87   : > { %1360 = vmatmul.mubr.f32.gmra.mrb[28].mxu1 %v3915_v35  ;;  %3164 = vmatprep.subr.bf16.mxu1 %v4901_v3 }
  0x88   : > { %1585 = vmatmul.mubr.f32.gmra.mrb[28].mxu0 %v3998_v22  ;;  %1364 = vmatprep.mubr.f32.mxu1 %v4001_v23  ;;  %v4154_v22 = vld [vmem:[%s3462_s20 + $0x138] sm:$0xff] }
  0x89   : > { %1589 = vmatprep.mubr.f32.mxu0 %v4004_v28  ;;  %3066 = vmatpush1.bf16.msra.mxu0 %v3065_v27  ;;  %v4060_v27 = vld [vmem:[%s3462_s20 + $0xe0] sm:$0xff]  ;;  %4982 = vst [vmem:[#allocation24_spill] sm:$0xff] %v4154_v22 }
  0x8a   : > { %3067 = vmatprep.subr.bf16.mxu0 %v4901_v3  ;;  %3180 = vmatpush1.bf16.msra.mxu1 %v4014_v37  ;;  %v4112_v37 = vld [vmem:[%s3462_s20 + $0xf9] sm:$0xff] }
  0x8b   : > { %1365 = vmatmul.mubr.f32.gmra.mrb[30].mxu1 %v3944_v49  ;;  %3165 = vmatprep.subr.bf16.mxu1 %v4901_v3 }
  0x8c   : > { %1590 = vmatmul.mubr.f32.gmra.mrb[30].mxu0 %v4034_v52  ;;  %1369 = vmatprep.mubr.f32.mxu1 %v4037_v57  ;;  %v4141_v52 = vld [vmem:[%s3462_s20 + $0x128] sm:$0xff] }
  0x8d   : > { %1594 = vmatprep.mubr.f32.mxu0 %v4040_v1  ;;  %3069 = vmatpush1.bf16.msra.mxu0 %v3068_v59  ;;  %v4096_v59 = vld [vmem:[%s3462_s20 + $0xe2] sm:$0xff]  ;;  %4979 = vst [vmem:[#allocation21_spill] sm:$0xff] %v4141_v52 }
  0x8e   : > { %3181 = vmatpush1.bf16.msra.mxu1 %v4044_v9  ;;  %3070 = vmatprep.subr.bf16.mxu0 %v4901_v3  ;;  %4973 = vst [vmem:[#allocation15_spill] sm:$0xff] %v4096_v59  ;;  %v4099_v3 = vld [vmem:[%s3462_s20 + $0xf1] sm:$0xff]  ;;  %v4102_v9 = vld [vmem:[%s3462_s20 + $0x108] sm:$0xff] }
  0x8f   : > { %1370 = vmatmul.mubr.f32.gmra.mrb[32].mxu1 %v3974_v6  ;;  %3119 = vmatprep.subr.bf16.mxu1 %v4048_v10 }
  0x90   : > { %1595 = vmatmul.mubr.f32.gmra.mrb[32].mxu0 %v4054_v14  ;;  %1374 = vmatprep.mubr.f32.mxu1 %v4057_v19  ;;  %v4128_v14 = vld [vmem:[%s3462_s20 + $0x120] sm:$0xff] }
  0x91   : > { %1599 = vmatprep.mubr.f32.mxu0 %v4060_v27  ;;  %4977 = vst [vmem:[#allocation19_spill] sm:$0xff] %v4128_v14 }
  0x93   : > { %1375 = vmatmul.mubr.f32.gmra.mrb[34].mxu1 %v4004_v28 }
  0x94   : > { %1600 = vmatmul.mubr.f32.gmra.mrb[34].mxu0 %v4070_v32  ;;  %1379 = vmatprep.mubr.f32.mxu1 %v4073_v36  ;;  %v4115_v32 = vld [vmem:[%s3462_s20 + $0x110] sm:$0xff] }
  0x95   : > { %1604 = vmatprep.mubr.f32.mxu0 %v4076_v40  ;;  %4975 = vst [vmem:[#allocation17_spill] sm:$0xff] %v4115_v32 }
  0x97   : > { %1380 = vmatmul.mubr.f32.gmra.mrb[36].mxu1 %v4040_v1 }
  0x98   : > { %1605 = vmatmul.mubr.f32.gmra.mrb[36].mxu0 %v4083_v41  ;;  %1384 = vmatprep.mubr.f32.mxu1 %v4086_v47  ;;  %v4109_v41 = vld [vmem:[%s3462_s20 + $0xf2] sm:$0xff] }
  0x99   : > { %1609 = vmatprep.mubr.f32.mxu0 %v4089_v51  ;;  %4974 = vst [vmem:[#allocation16_spill] sm:$0xff] %v4109_v41 }
  0x9b   : > { %1385 = vmatmul.mubr.f32.gmra.mrb[38].mxu1 %v4060_v27 }
  0x9c   : > { %1610 = vmatmul.mubr.f32.gmra.mrb[38].mxu0 %v4096_v59  ;;  %1389 = vmatprep.mubr.f32.mxu1 %v4099_v3  ;;  %v4122_v59 = vld [vmem:[%s3462_s20 + $0xfa] sm:$0xff] }
  0x9d   : > { %1614 = vmatprep.mubr.f32.mxu0 %v4102_v9  ;;  %4976 = vst [vmem:[#allocation18_spill] sm:$0xff] %v4122_v59 }
  0x9f   : > { %1390 = vmatmul.mubr.f32.gmra.mrb[40].mxu1 %v4076_v40 }
  0xa0   : > { %1615 = vmatmul.mubr.f32.gmra.mrb[40].mxu0 %v4109_v41  ;;  %1394 = vmatprep.mubr.f32.mxu1 %v4112_v37  ;;  %v4135_v41 = vld [vmem:[%s3462_s20 + $0x10a] sm:$0xff] }
  0xa1   : > { %1619 = vmatprep.mubr.f32.mxu0 %v4115_v32  ;;  %4978 = vst [vmem:[#allocation20_spill] sm:$0xff] %v4135_v41 }
  0xa3   : > { %1395 = vmatmul.mubr.f32.gmra.mrb[42].mxu1 %v4089_v51 }
  0xa4   : > { %1620 = vmatmul.mubr.f32.gmra.mrb[42].mxu0 %v4122_v59  ;;  %1399 = vmatprep.mubr.f32.mxu1 %v4125_v13  ;;  %v4148_v59 = vld [vmem:[%s3462_s20 + $0x112] sm:$0xff] }
  0xa5   : > { %1624 = vmatprep.mubr.f32.mxu0 %v4128_v14  ;;  %4980 = vst [vmem:[#allocation22_spill] sm:$0xff] %v4148_v59 }
  0xa7   : > { %1400 = vmatmul.mubr.f32.gmra.mrb[44].mxu1 %v4102_v9 }
  0xa8   : > { %1625 = vmatmul.mubr.f32.gmra.mrb[44].mxu0 %v4135_v41  ;;  %1404 = vmatprep.mubr.f32.mxu1 %v4138_v56  ;;  %v4161_v41 = vld [vmem:[%s3462_s20 + $0x122] sm:$0xff] }
  0xa9   : > { %1629 = vmatprep.mubr.f32.mxu0 %v4141_v52  ;;  %4983 = vst [vmem:[#allocation25_spill] sm:$0xff] %v4161_v41 }
  0xab   : > { %1405 = vmatmul.mubr.f32.gmra.mrb[46].mxu1 %v4115_v32  ;;  %v4180_v32 = vld [vmem:[%s3462_s20 + $0x150] sm:$0xff] }
  0xac   : > { %1630 = vmatmul.mubr.f32.gmra.mrb[46].mxu0 %v4148_v59  ;;  %1409 = vmatprep.mubr.f32.mxu1 %v4151_v38  ;;  %v4174_v59 = vld [vmem:[%s3462_s20 + $0x12a] sm:$0xff]  ;;  %v4177_v38 = vld [vmem:[%s3462_s20 + $0x139] sm:$0xff]  ;;  %4988 = vst [vmem:[#allocation30_spill] sm:$0xff] %v4180_v32 }
  0xad   : > { %1634 = vmatprep.mubr.f32.mxu0 %v4154_v22  ;;  %4986 = vst [vmem:[#allocation28_spill] sm:$0xff] %v4174_v59  ;;  %4987 = vst [vmem:[#allocation29_spill] sm:$0xff] %v4177_v38 }
  0xaf   : > { %1410 = vmatmul.mubr.f32.gmra.mrb[48].mxu1 %v4128_v14  ;;  %v4193_v14 = vld [vmem:[%s3462_s20 + $0x158] sm:$0xff] }
  0xb0   : > { %1635 = vmatmul.mubr.f32.gmra.mrb[48].mxu0 %v4161_v41  ;;  %1414 = vmatprep.mubr.f32.mxu1 %v4164_v26  ;;  %v4187_v41 = vld [vmem:[%s3462_s20 + $0x13a] sm:$0xff]  ;;  %4991 = vst [vmem:[#allocation33_spill] sm:$0xff] %v4193_v14 }
  0xb1   : > { %1639 = vmatprep.mubr.f32.mxu0 %v4167_v60  ;;  %4989 = vst [vmem:[#allocation31_spill] sm:$0xff] %v4187_v41  ;;  %v4190_v26 = vld [vmem:[%s3462_s20 + $0x141] sm:$0xff] }
  0xb2   : > { %4990 = vst [vmem:[#allocation32_spill] sm:$0xff] %v4190_v26 }
  0xb3   : > { %1415 = vmatmul.mubr.f32.gmra.mrb[50].mxu1 %v4141_v52  ;;  %v4206_v52 = vld [vmem:[%s3462_s20 + $0x168] sm:$0xff] }
  0xb4   : > { %1640 = vmatmul.mubr.f32.gmra.mrb[50].mxu0 %v4174_v59  ;;  %1419 = vmatprep.mubr.f32.mxu1 %v4177_v38  ;;  %v4200_v59 = vld [vmem:[%s3462_s20 + $0x142] sm:$0xff]  ;;  %v4203_v38 = vld [vmem:[%s3462_s20 + $0x151] sm:$0xff] }
  0xb5   : > { %1644 = vmatprep.mubr.f32.mxu0 %v4180_v32  ;;  %4992 = vst [vmem:[#allocation34_spill] sm:$0xff] %v4200_v59  ;;  %4993 = vst [vmem:[#allocation35_spill] sm:$0xff] %v4203_v38 }
  0xb7   : > { %1420 = vmatmul.mubr.f32.gmra.mrb[52].mxu1 %v4154_v22  ;;  %v4219_v22 = vld [vmem:[%s3462_s20 + $0x170] sm:$0xff] }
  0xb8   : > { %1645 = vmatmul.mubr.f32.gmra.mrb[52].mxu0 %v4187_v41  ;;  %1424 = vmatprep.mubr.f32.mxu1 %v4190_v26  ;;  %v4213_v41 = vld [vmem:[%s3462_s20 + $0x152] sm:$0xff] }
  0xb9   : > { %1649 = vmatprep.mubr.f32.mxu0 %v4193_v14  ;;  %4994 = vst [vmem:[#allocation36_spill] sm:$0xff] %v4213_v41  ;;  %v4216_v26 = vld [vmem:[%s3462_s20 + $0x159] sm:$0xff] }
  0xba   : > { %4995 = vst [vmem:[#allocation37_spill] sm:$0xff] %v4216_v26 }
  0xbb   : > { %1425 = vmatmul.mubr.f32.gmra.mrb[54].mxu1 %v4167_v60  ;;  %v4232_v60 = vld [vmem:[%s3462_s20 + $0x180] sm:$0xff] }
  0xbc   : > { %1650 = vmatmul.mubr.f32.gmra.mrb[54].mxu0 %v4200_v59  ;;  %1429 = vmatprep.mubr.f32.mxu1 %v4203_v38  ;;  %v4226_v59 = vld [vmem:[%s3462_s20 + $0x15a] sm:$0xff]  ;;  %v4229_v38 = vld [vmem:[%s3462_s20 + $0x169] sm:$0xff]  ;;  %4997 = vst [vmem:[#allocation39_spill] sm:$0xff] %v4232_v60 }
  0xbd   : > { %1654 = vmatprep.mubr.f32.mxu0 %v4206_v52  ;;  %4996 = vst [vmem:[#allocation38_spill] sm:$0xff] %v4226_v59 }
  0xbf   : > { %1430 = vmatmul.mubr.f32.gmra.mrb[56].mxu1 %v4180_v32  ;;  %v4245_v32 = vld [vmem:[%s3462_s20 + $0x188] sm:$0xff] }
  0xc0   : > { %1655 = vmatmul.mubr.f32.gmra.mrb[56].mxu0 %v4213_v41  ;;  %1434 = vmatprep.mubr.f32.mxu1 %v4216_v26  ;;  %v4239_v41 = vld [vmem:[%s3462_s20 + $0x16a] sm:$0xff]  ;;  %4999 = vst [vmem:[#allocation41_spill] sm:$0xff] %v4245_v32 }
  0xc1   : > { %1659 = vmatprep.mubr.f32.mxu0 %v4219_v22  ;;  %4998 = vst [vmem:[#allocation40_spill] sm:$0xff] %v4239_v41  ;;  %v4242_v26 = vld [vmem:[%s3462_s20 + $0x171] sm:$0xff] }
  0xc3   : > { %1435 = vmatmul.mubr.f32.gmra.mrb[58].mxu1 %v4193_v14  ;;  %v4252_v14 = vld [vmem:[%s3462_s20 + $0x172] sm:$0xff] }
  0xc4   : > { %1660 = vmatmul.mubr.f32.gmra.mrb[58].mxu0 %v4226_v59  ;;  %1439 = vmatprep.mubr.f32.mxu1 %v4229_v38  ;;  %5000 = vst [vmem:[#allocation42_spill] sm:$0xff] %v4252_v14  ;;  %v1211_v59 = vld [vmem:[%s4897_s1 + $0x410] sm:$0xff] }
  0xc5   : > { %1664 = vmatprep.mubr.f32.mxu0 %v4232_v60  ;;  %v1214_v60 = vld [vmem:[%s4897_s1 + $0x428] sm:$0xff] }
  0xc7   : > { %1440 = vmatmul.mubr.f32.gmra.mrb[60].mxu1 %v4206_v52 }
  0xc8   : > { %1665 = vmatmul.mubr.f32.gmra.mrb[60].mxu0 %v4239_v41  ;;  %1444 = vmatprep.mubr.f32.mxu1 %v4242_v26  ;;  %v1212_v41 = vld [vmem:[%s4897_s1 + $0x418] sm:$0xff] }
  0xc9   : > { %1669 = vmatprep.mubr.f32.mxu0 %v4245_v32  ;;  %v3122_v32 = vpack.c.bf16 %v1212_v41, %v1211_v59  ;;  %v5035_v59 = vld [vmem:[#allocation28_spill] sm:$0xff] }
  0xcb   : > { %1445 = vmatmul.mubr.f32.gmra.mrb[62].mxu1 %v4219_v22 }
  0xcc   : > { %1670 = vmatmul.mubr.f32.gmra.mrb[62].mxu0 %v4252_v14  ;;  %2004 = vmatprep.mubr.f32.mxu1 %v3912_v31  ;;  %v1213_v14 = vld [vmem:[%s4897_s1 + $0x420] sm:$0xff] }
  0xcd   : > { %1739 = vmatprep.mubr.f32.mxu0 %v3668_v61  ;;  %v5001_v61 = vmov 0.0|0.0  }
  0xcf   : > { %2005 = vmatmul.mubr.f32.vlgmr.msra.gmra.mrb[64].mxu1 %v3857_v42  ;;  %v1215_v42 = vld [vmem:[%s4897_s1 + $0x430] sm:$0xff] }
  0xd0   : > { %1740 = vmatmul.mubr.f32.vlgmr.msra.gmra.mrb[0].mxu0 %v3646_v53  ;;  %2009 = vmatprep.mubr.f32.mxu1 %v3941_v46  ;;  %v3126_v53 = vpack.c.bf16 %v1214_v60, %v1213_v14  ;;  %v5022_v60 = vld [vmem:[#allocation14_spill] sm:$0xff]  ;;  %v5030_v14 = vld [vmem:[#allocation20_spill] sm:$0xff] }
  0xd1   : > { %3072 = vmatpush1.bf16.msra.mxu0 %v3635_v48  ;;  %1744 = vmatprep.mubr.f32.mxu0 %v3695_v7  ;;  %v1216_v48 = vld [vmem:[%s4897_s1 + $0x438] sm:$0xff]  ;;  %v1217_v7 = vld [vmem:[%s4897_s1 + $0x440] sm:$0xff] }
  0xd2   : > { %3073 = vmatprep.subr.bf16.mxu0 %v5001_v61  ;;  %3121 = vmatpush3.bf16.msra.mxu1 %v4048_v10  ;;  %v4409_v10 = vld [vmem:[%s3462_s20 + $0x181] sm:$0xff] }
  0xd3   : > { %2010 = vmatmul.mubr.f32.gmra.mrb[66].mxu1 %v3886_v20  ;;  %3123 = vmatprep.subr.bf16.mxu1 %v3122_v32  ;;  %v5015_v20 = vld [vmem:[#allocation7_spill] sm:$0xff] }
  0xd4   : > { %1745 = vmatmul.mubr.f32.gmra.mrb[2].mxu0 %v3671_v62  ;;  %2014 = vmatprep.mubr.f32.mxu1 %v3971_v0  ;;  %v3130_v62 = vpack.c.bf16 %v1216_v48, %v1215_v42  ;;  %v2764_v42 = vld [vmem:[%s3462_s20 + $0x3a] sm:$0xff] }
  0xd5   : > { %1749 = vmatprep.mubr.f32.mxu0 %v3721_v15  ;;  %3075 = vmatpush1.bf16.msra.mxu0 %v3657_v58  ;;  %v1218_v15 = vld [vmem:[%s4897_s1 + $0x448] sm:$0xff]  ;;  %v5036_v48 = vld [vmem:[#allocation31_spill] sm:$0xff] }
  0xd6   : > { %3076 = vmatprep.subr.bf16.mxu0 %v5001_v61  ;;  %3125 = vmatpush3.bf16.msra.mxu1 %v3122_v32  ;;  %v3134_v58 = vpack.c.bf16 %v1218_v15, %v1217_v7 }
  0xd7   : > { %2015 = vmatmul.mubr.f32.gmra.mrb[68].mxu1 %v3915_v35  ;;  %3127 = vmatprep.subr.bf16.mxu1 %v3126_v53  ;;  %v5018_v35 = vld [vmem:[#allocation13_spill] sm:$0xff] }
  0xd8   : > { %1750 = vmatmul.mubr.f32.gmra.mrb[4].mxu0 %v3698_v8  ;;  %2019 = vmatprep.mubr.f32.mxu1 %v4001_v23  ;;  %v1219_v8 = vld [vmem:[%s4897_s1 + $0x450] sm:$0xff] }
  0xd9   : > { %1754 = vmatprep.mubr.f32.mxu0 %v3747_v24  ;;  %3078 = vmatpush1.bf16.msra.mxu0 %v3682_v4  ;;  %v1220_v24 = vld [vmem:[%s4897_s1 + $0x458] sm:$0xff] }
  0xda   : > { %3079 = vmatprep.subr.bf16.mxu0 %v5001_v61  ;;  %3129 = vmatpush3.bf16.msra.mxu1 %v3126_v53  ;;  %v3138_v4 = vpack.c.bf16 %v1220_v24, %v1219_v8  ;;  %v5037_v8 = vld [vmem:[#allocation34_spill] sm:$0xff]  ;;  %v2767_v24 = vld [vmem:[%s3462_s20 + $0x62] sm:$0xff] }
  0xdb   : > { %2020 = vmatmul.mubr.f32.gmra.mrb[70].mxu1 %v3944_v49  ;;  %3131 = vmatprep.subr.bf16.mxu1 %v3130_v62  ;;  %v5021_v49 = vld [vmem:[#allocation35_spill] sm:$0xff] }
  0xdc   : > { %1755 = vmatmul.mubr.f32.gmra.mrb[6].mxu0 %v3724_v16  ;;  %2024 = vmatprep.mubr.f32.mxu1 %v4037_v57  ;;  %v1221_v16 = vld [vmem:[%s4897_s1 + $0x460] sm:$0xff] }
  0xdd   : > { %1759 = vmatprep.mubr.f32.mxu0 %v3773_v33  ;;  %3081 = vmatpush1.bf16.msra.mxu0 %v3709_v12  ;;  %v1222_v33 = vld [vmem:[%s4897_s1 + $0x468] sm:$0xff] }
  0xde   : > { %3082 = vmatprep.subr.bf16.mxu0 %v5001_v61  ;;  %3133 = vmatpush3.bf16.msra.mxu1 %v3130_v62  ;;  %v3142_v12 = vpack.c.bf16 %v1222_v33, %v1221_v16  ;;  %v2765_v62 = vld [vmem:[%s3462_s20 + $0x4a] sm:$0xff] }
  0xdf   : > { %2025 = vmatmul.mubr.f32.gmra.mrb[72].mxu1 %v3974_v6  ;;  %3135 = vmatprep.subr.bf16.mxu1 %v3134_v58  ;;  %v5024_v6 = vld [vmem:[#allocation30_spill] sm:$0xff]  ;;  %v2768_v33 = vld [vmem:[%s3462_s20 + $0x6a] sm:$0xff] }
  0xe0   : > { %1760 = vmatmul.mubr.f32.gmra.mrb[8].mxu0 %v3750_v25  ;;  %2029 = vmatprep.mubr.f32.mxu1 %v4057_v19  ;;  %v1223_v25 = vld [vmem:[%s4897_s1 + $0x470] sm:$0xff] }
  0xe1   : > { %1764 = vmatprep.mubr.f32.mxu0 %v3799_v43  ;;  %3084 = vmatpush1.bf16.msra.mxu0 %v3735_v21  ;;  %v1224_v43 = vld [vmem:[%s4897_s1 + $0x478] sm:$0xff] }
  0xe2   : > { %3085 = vmatprep.subr.bf16.mxu0 %v5001_v61  ;;  %3137 = vmatpush3.bf16.msra.mxu1 %v3134_v58  ;;  %v3146_v21 = vpack.c.bf16 %v1224_v43, %v1223_v25  ;;  %v2766_v58 = vld [vmem:[%s3462_s20 + $0x52] sm:$0xff]  ;;  %v2769_v25 = vld [vmem:[%s3462_s20 + $0x7a] sm:$0xff] }
  0xe3   : > { %2030 = vmatmul.mubr.f32.gmra.mrb[74].mxu1 %v4004_v28  ;;  %3139 = vmatprep.subr.bf16.mxu1 %v3138_v4  ;;  %v5026_v28 = vld [vmem:[#allocation15_spill] sm:$0xff] }
  0xe4   : > { %1765 = vmatmul.mubr.f32.gmra.mrb[10].mxu0 %v3776_v34  ;;  %2034 = vmatprep.mubr.f32.mxu1 %v4073_v36  ;;  %v5003_v34 = vld [vmem:[#allocation3_spill] sm:$0xff] }
  0xe5   : > { %1769 = vmatprep.mubr.f32.mxu0 %v3825_v54  ;;  %3087 = vmatpush1.bf16.msra.mxu0 %v3761_v30  ;;  %v5002_v30 = vld [vmem:[#allocation6_spill] sm:$0xff]  ;;  %v5007_v54 = vld [vmem:[#allocation4_spill] sm:$0xff] }
  0xe6   : > { %3088 = vmatprep.subr.bf16.mxu0 %v5001_v61  ;;  %3141 = vmatpush3.bf16.msra.mxu1 %v3138_v4 }
  0xe7   : > { %2035 = vmatmul.mubr.f32.gmra.mrb[76].mxu1 %v4040_v1  ;;  %3143 = vmatprep.subr.bf16.mxu1 %v3142_v12  ;;  %v5028_v1 = vld [vmem:[#allocation16_spill] sm:$0xff] }
  0xe8   : > { %1770 = vmatmul.mubr.f32.gmra.mrb[12].mxu0 %v3802_v44  ;;  %2039 = vmatprep.mubr.f32.mxu1 %v4086_v47  ;;  %v5005_v44 = vld [vmem:[#allocation23_spill] sm:$0xff] }
  0xe9   : > { %1774 = vmatprep.mubr.f32.mxu0 %v3851_v2  ;;  %3090 = vmatpush1.bf16.msra.mxu0 %v3787_v39  ;;  %v5004_v39 = vld [vmem:[#allocation17_spill] sm:$0xff]  ;;  %v5010_v2 = vld [vmem:[#allocation10_spill] sm:$0xff] }
  0xea   : > { %3091 = vmatprep.subr.bf16.mxu0 %v5001_v61  ;;  %3145 = vmatpush3.bf16.msra.mxu1 %v3142_v12  ;;  %v5038_v12 = vld [vmem:[#allocation36_spill] sm:$0xff] }
  0xeb   : > { %2040 = vmatmul.mubr.f32.gmra.mrb[78].mxu1 %v4060_v27  ;;  %3147 = vmatprep.subr.bf16.mxu1 %v3146_v21  ;;  %v2761_v27 = vld [vmem:[%s3462_s20 + $0x199] sm:$0xff] }
  0xec   : > { %1775 = vmatmul.mubr.f32.gmra.mrb[14].mxu0 %v3828_v55  ;;  %2044 = vmatprep.mubr.f32.mxu1 %v4099_v3  ;;  %v5008_v55 = vld [vmem:[#allocation19_spill] sm:$0xff] }
  0xed   : > { %1779 = vmatprep.mubr.f32.mxu0 %v3880_v17  ;;  %3093 = vmatpush1.bf16.msra.mxu0 %v3813_v50  ;;  %v5006_v50 = vld [vmem:[#allocation8_spill] sm:$0xff]  ;;  %v5013_v17 = vld [vmem:[#allocation29_spill] sm:$0xff] }
  0xee   : > { %3094 = vmatprep.subr.bf16.mxu0 %v5001_v61  ;;  %3149 = vmatpush3.bf16.msra.mxu1 %v3146_v21 }
  0xef   : > { %2045 = vmatmul.mubr.f32.gmra.mrb[80].mxu1 %v4076_v40  ;;  %v5034_v40 = vld [vmem:[#allocation25_spill] sm:$0xff] }
  0xf0   : > { %1780 = vmatmul.mubr.f32.gmra.mrb[16].mxu0 %v3854_v5  ;;  %2049 = vmatprep.mubr.f32.mxu1 %v4112_v37  ;;  %v5011_v5 = vld [vmem:[#allocation5_spill] sm:$0xff] }
  0xf1   : > { %1784 = vmatprep.mubr.f32.mxu0 %v3909_v29  ;;  %3096 = vmatpush1.bf16.msra.mxu0 %v3839_v63  ;;  %v5009_v63 = vld [vmem:[#allocation26_spill] sm:$0xff]  ;;  %v5016_v29 = vld [vmem:[#allocation24_spill] sm:$0xff] }
  0xf2   : > { %3097 = vmatprep.subr.bf16.mxu0 %v5001_v61 }
  0xf3   : > { %2050 = vmatmul.mubr.f32.gmra.mrb[82].mxu1 %v4089_v51  ;;  %v2730_v51 = vld [vmem:[%s3462_s20 + $0x1a0] sm:$0xff] }
  0xf4   : > { %1785 = vmatmul.mubr.f32.gmra.mrb[18].mxu0 %v3883_v18  ;;  %2054 = vmatprep.mubr.f32.mxu1 %v4125_v13  ;;  %v5014_v18 = vld [vmem:[#allocation12_spill] sm:$0xff] }
  0xf5   : > { %1789 = vmatprep.mubr.f32.mxu0 %v3938_v45  ;;  %3099 = vmatpush1.bf16.msra.mxu0 %v3867_v11  ;;  %v5012_v11 = vld [vmem:[#allocation21_spill] sm:$0xff] }
  0xf6   : > { %3100 = vmatprep.subr.bf16.mxu0 %v5001_v61  ;;  %v5019_v45 = vld [vmem:[#allocation9_spill] sm:$0xff] }
  0xf7   : > { %2055 = vmatmul.mubr.f32.gmra.mrb[84].mxu1 %v4102_v9  ;;  %v5029_v9 = vld [vmem:[#allocation18_spill] sm:$0xff] }
  0xf8   : > { %1790 = vmatmul.mubr.f32.gmra.mrb[20].mxu0 %v3912_v31  ;;  %2059 = vmatprep.mubr.f32.mxu1 %v4138_v56  ;;  %v5017_v31 = vld [vmem:[#allocation32_spill] sm:$0xff] }
  0xf9   : > { %1794 = vmatprep.mubr.f32.mxu0 %v5002_v30  ;;  %3102 = vmatpush1.bf16.msra.mxu0 %v5003_v34  ;;  %v2770_v30 = vld [vmem:[%s3462_s20 + $0x82] sm:$0xff]  ;;  %v5039_v34 = vld [vmem:[#allocation38_spill] sm:$0xff] }
  0xfa   : > { %3103 = vmatprep.subr.bf16.mxu0 %v5001_v61 }
  0xfb   : > { %2060 = vmatmul.mubr.f32.gmra.mrb[86].mxu1 %v5004_v39  ;;  %v2771_v39 = vld [vmem:[%s3462_s20 + $0x92] sm:$0xff] }
  0xfc   : > { %1795 = vmatmul.mubr.f32.gmra.mrb[22].mxu0 %v3941_v46  ;;  %2064 = vmatprep.mubr.f32.mxu1 %v5005_v44  ;;  %v5020_v46 = vld [vmem:[#allocation27_spill] sm:$0xff] }
  0xfd   : > { %1799 = vmatprep.mubr.f32.mxu0 %v5006_v50  ;;  %3105 = vmatpush1.bf16.msra.mxu0 %v5007_v54  ;;  %v2772_v54 = vld [vmem:[%s3462_s20 + $0x9a] sm:$0xff] }
  0xfe   : > { %3106 = vmatprep.subr.bf16.mxu0 %v5001_v61 }
  0xff   : > { %2065 = vmatmul.mubr.f32.gmra.mrb[88].mxu1 %v5008_v55  ;;  %v5040_v55 = vld [vmem:[#allocation40_spill] sm:$0xff] }
 0x100   : > { %1800 = vmatmul.mubr.f32.gmra.mrb[24].mxu0 %v3971_v0  ;;  %2069 = vmatprep.mubr.f32.mxu1 %v5009_v63  ;;  %v5023_v0 = vld [vmem:[#allocation11_spill] sm:$0xff] }
 0x101   : > { %1804 = vmatprep.mubr.f32.mxu0 %v5010_v2  ;;  %3108 = vmatpush1.bf16.msra.mxu0 %v5011_v5 }
 0x102   : > { %3109 = vmatprep.subr.bf16.mxu0 %v5001_v61 }
 0x103   : > { %2070 = vmatmul.mubr.f32.gmra.mrb[90].mxu1 %v5012_v11  ;;  %v2774_v11 = vld [vmem:[%s3462_s20 + $0xb2] sm:$0xff] }
 0x104   : > { %1805 = vmatmul.mubr.f32.gmra.mrb[26].mxu0 %v4001_v23  ;;  %2074 = vmatprep.mubr.f32.mxu1 %v5013_v17  ;;  %v5025_v23 = vld [vmem:[#allocation37_spill] sm:$0xff] }
 0x105   : > { %1809 = vmatprep.mubr.f32.mxu0 %v5014_v18  ;;  %3111 = vmatpush1.bf16.msra.mxu0 %v5015_v20  ;;  %v2775_v18 = vld [vmem:[%s3462_s20 + $0xc2] sm:$0xff] }
 0x106   : > { %3112 = vmatprep.subr.bf16.mxu0 %v5001_v61  ;;  %v4473_v20 = vld [vmem:[%s3462_s20 + $0x182] sm:$0xff] }
 0x107   : > { %2075 = vmatmul.mubr.f32.gmra.mrb[92].mxu1 %v5016_v29 }
 0x108   : > { %1810 = vmatmul.mubr.f32.gmra.mrb[28].mxu0 %v4037_v57  ;;  %2079 = vmatprep.mubr.f32.mxu1 %v5017_v31  ;;  %v5027_v57 = vld [vmem:[#allocation33_spill] sm:$0xff] }
 0x109   : > { %1814 = vmatprep.mubr.f32.mxu0 %v5018_v35  ;;  %3114 = vmatpush1.bf16.msra.mxu0 %v5019_v45  ;;  %v2776_v35 = vld [vmem:[%s3462_s20 + $0xca] sm:$0xff] }
 0x10a   : > { %3115 = vmatprep.subr.bf16.mxu0 %v5001_v61  ;;  %v2763_v61 = vld [vmem:[%s3462_s20 + $0x32] sm:$0xff]  ;;  %v4482_v45 = vld [vmem:[%s3462_s20 + $0x18a] sm:$0xff] }
 0x10b   : > { %2080 = vmatmul.mubr.f32.gmra.mrb[94].mxu1 %v5020_v46 }
 0x10c   : > { %1815 = vmatmul.mubr.f32.gmra.mrb[30].mxu0 %v4057_v19  ;;  %2084 = vmatprep.mubr.f32.mxu1 %v5021_v49  ;;  %v4416_v19 = vld [vmem:[%s3462_s20 + $0x189] sm:$0xff] }
 0x10d   : > { %1819 = vmatprep.mubr.f32.mxu0 %v5022_v60  ;;  %3117 = vmatpush1.bf16.msra.mxu0 %v5023_v0  ;;  %v2778_v60 = vld [vmem:[%s3462_s20 + $0xe2] sm:$0xff] }
 0x10f   : > { %2085 = vmatmul.mubr.f32.gmra.mrb[96].mxu1 %v5024_v6 }
 0x110   : > { %1820 = vmatmul.mubr.f32.gmra.mrb[32].mxu0 %v4073_v36  ;;  %2089 = vmatprep.mubr.f32.mxu1 %v5025_v23  ;;  %v2729_v36 = vld [vmem:[%s3462_s20 + $0x198] sm:$0xff] }
 0x111   : > { %1824 = vmatprep.mubr.f32.mxu0 %v5026_v28  ;;  %v2732_v28 = vld [vmem:[%s3462_s20 + $0x39] sm:$0xff] }
 0x113   : > { %2090 = vmatmul.mubr.f32.gmra.mrb[98].mxu1 %v5027_v57 }
 0x114   : > { %1825 = vmatmul.mubr.f32.gmra.mrb[34].mxu0 %v4086_v47  ;;  %2094 = vmatprep.mubr.f32.mxu1 %v4229_v38 }
 0x115   : > { %1829 = vmatprep.mubr.f32.mxu0 %v5028_v1 }
 0x117   : > { %2095 = vmatmul.mubr.f32.gmra.mrb[100].mxu1 %v4206_v52  ;;  %v5031_v52 = vld [vmem:[#allocation39_spill] sm:$0xff] }
 0x118   : > { %1830 = vmatmul.mubr.f32.gmra.mrb[36].mxu0 %v4099_v3  ;;  %2099 = vmatprep.mubr.f32.mxu1 %v4242_v26  ;;  %v5032_v3 = vld [vmem:[#allocation22_spill] sm:$0xff] }
 0x119   : > { %1834 = vmatprep.mubr.f32.mxu0 %v5029_v9 }
 0x11b   : > { %2100 = vmatmul.mubr.f32.gmra.mrb[102].mxu1 %v4219_v22 }
 0x11c   : > { %1835 = vmatmul.mubr.f32.gmra.mrb[38].mxu0 %v4112_v37  ;;  %2104 = vmatprep.mubr.f32.mxu1 %v4409_v10  ;;  %v5033_v37 = vld [vmem:[#allocation41_spill] sm:$0xff] }
 0x11d   : > { %1839 = vmatprep.mubr.f32.mxu0 %v5030_v14 }
 0x11f   : > { %2105 = vmatmul.mubr.f32.gmra.mrb[104].mxu1 %v5031_v52  ;;  %v2700_v52 = vld [vmem:[%s3462_s20 + $0x38] sm:$0xff] }
 0x120   : > { %1840 = vmatmul.mubr.f32.gmra.mrb[40].mxu0 %v4125_v13  ;;  %2109 = vmatprep.mubr.f32.mxu1 %v4416_v19  ;;  %v2762_v13 = vld [vmem:[%s3462_s20 + $0x1a1] sm:$0xff] }
 0x121   : > { %1844 = vmatprep.mubr.f32.mxu0 %v5032_v3 }
 0x122   : > { %v4423_v22 = vpop.f32.mrb[0].mxu1 }
 0x123   : > { %2110 = vmatmul.mubr.f32.gmra.mrb[106].mxu1 %v5033_v37  ;;  %v1293_v32 = vpop.f32.mrb[1].mxu1  ;;  %v2701_v37 = vld [vmem:[%s3462_s20 + $0x48] sm:$0xff] }
 0x124   : > { %1845 = vmatmul.mubr.f32.gmra.mrb[42].mxu0 %v4138_v56  ;;  %2114 = vmatprep.mubr.f32.mxu1 %v2761_v27  ;;  %v2733_v27 = vld [vmem:[%s3462_s20 + $0x49] sm:$0xff] }
 0x125   : > { %1849 = vmatprep.mubr.f32.mxu0 %v5034_v40 }
 0x126   : > { %v4430_v41 = vpop.f32.mrb[2].mxu1 }
 0x127   : > { %2115 = vmatmul.mubr.f32.gmra.mrb[108].mxu1 %v2729_v36  ;;  %v1298_v47 = vpop.f32.mrb[3].mxu1  ;;  %v2702_v36 = vld [vmem:[%s3462_s20 + $0x50] sm:$0xff] }
 0x128   : > { %1850 = vmatmul.mubr.f32.gmra.mrb[44].mxu0 %v5005_v44  ;;  %2119 = vmatprep.mubr.f32.mxu1 %v2762_v13  ;;  %v2703_v47 = vld [vmem:[%s3462_s20 + $0x60] sm:$0xff] }
 0x129   : > { %1854 = vmatprep.mubr.f32.mxu0 %v5035_v59 }
 0x12a   : > { %v4436_v56 = vpop.f32.mrb[4].mxu1 }
 0x12b   : > { %2120 = vmatmul.mubr.f32.gmra.mrb[110].mxu1 %v2730_v51  ;;  %v1303_v53 = vpop.f32.mrb[5].mxu1  ;;  %v2736_v51 = vld [vmem:[%s3462_s20 + $0x69] sm:$0xff] }
 0x12c   : > { %1855 = vmatmul.mubr.f32.gmra.mrb[46].mxu0 %v5009_v63  ;;  %2878 = vmatprep.mubr.f32.mxu1 %v2763_v61  ;;  %v2773_v63 = vld [vmem:[%s3462_s20 + $0xaa] sm:$0xff] }
 0x12d   : > { %1859 = vmatprep.mubr.f32.mxu0 %v5036_v48  ;;  %v2704_v53 = vld [vmem:[%s3462_s20 + $0x68] sm:$0xff] }
 0x12e   : > { %v4442_v7 = vpop.f32.mrb[6].mxu1 }
 0x12f   : > { %2879 = vmatmul.mubr.f32.vlgmr.msra.gmra.mrb[112].mxu1 %v2764_v42  ;;  %v1308_v15 = vpop.f32.mrb[7].mxu1  ;;  %v2737_v42 = vld [vmem:[%s3462_s20 + $0x79] sm:$0xff] }
 0x130   : > { %1860 = vmatmul.mubr.f32.gmra.mrb[48].mxu0 %v5013_v17  ;;  %2881 = vmatprep.mubr.f32.mxu1 %v2765_v62  ;;  %v5041_v17 = vld [vmem:[#allocation42_spill] sm:$0xff] }
 0x131   : > { %1864 = vmatprep.mubr.f32.mxu0 %v5037_v8  ;;  %v2705_v15 = vld [vmem:[%s3462_s20 + $0x78] sm:$0xff] }
 0x132   : > { %v4448_v4 = vpop.f32.mrb[8].mxu1 }
 0x133   : > { %2882 = vmatmul.mubr.f32.gmra.mrb[114].mxu1 %v2766_v58  ;;  %v1313_v16 = vpop.f32.mrb[9].mxu1  ;;  %v2793_v58 = vld [vmem:[%s3462_s20 + $0x19a] sm:$0xff] }
 0x134   : > { %1865 = vmatmul.mubr.f32.gmra.mrb[50].mxu0 %v5017_v31  ;;  %2884 = vmatprep.mubr.f32.mxu1 %v2767_v24 }
 0x135   : > { %1869 = vmatprep.mubr.f32.mxu0 %v5038_v12 }
 0x136   : > { %v4454_v43 = vpop.f32.mrb[10].mxu1 }
 0x137   : > { %2885 = vmatmul.mubr.f32.gmra.mrb[116].mxu1 %v2768_v33  ;;  %v1318_v21 = vpop.f32.mrb[11].mxu1  ;;  %v2794_v33 = vld [vmem:[%s3462_s20 + $0x1a2] sm:$0xff] }
 0x138   : > { %1870 = vmatmul.mubr.f32.gmra.mrb[52].mxu0 %v5021_v49  ;;  %2887 = vmatprep.mubr.f32.mxu1 %v2769_v25 }
 0x139   : > { %1874 = vmatprep.mubr.f32.mxu0 %v5039_v34 }
 0x13a   : > { %v4460_v44 = vpop.f32.mrb[12].mxu1 }
 0x13b   : > { %2888 = vmatmul.mubr.f32.gmra.mrb[118].mxu1 %v2770_v30  ;;  %v1323_v50 = vpop.f32.mrb[13].mxu1 }
 0x13c   : > { %1875 = vmatmul.mubr.f32.gmra.mrb[54].mxu0 %v5025_v23  ;;  %2890 = vmatprep.mubr.f32.mxu1 %v2771_v39  ;;  %v2699_v23 = vld [vmem:[%s3462_s20 + $0x30] sm:$0xff] }
 0x13d   : > { %1879 = vmatprep.mubr.f32.mxu0 %v5040_v55 }
 0x13e   : > { %v4466_v2 = vpop.f32.mrb[14].mxu1 }
 0x13f   : > { %2891 = vmatmul.mubr.f32.gmra.mrb[120].mxu1 %v2772_v54  ;;  %v1328_v5 = vpop.f32.mrb[15].mxu1 }
 0x140   : > { %1880 = vmatmul.mubr.f32.gmra.mrb[56].mxu0 %v4229_v38  ;;  %2893 = vmatprep.mubr.f32.mxu1 %v2773_v63  ;;  %v2777_v38 = vld [vmem:[%s3462_s20 + $0xda] sm:$0xff] }
 0x141   : > { %1884 = vmatprep.mubr.f32.mxu0 %v5041_v17 }
 0x142   : > { %v4475_v29 = vpop.f32.mrb[16].mxu1 }
 0x143   : > { %2894 = vmatmul.mubr.f32.gmra.mrb[122].mxu1 %v2774_v11  ;;  %v1333_v31 = vpop.f32.mrb[17].mxu1 }
 0x144   : > { %1885 = vmatmul.mubr.f32.gmra.mrb[58].mxu0 %v4242_v26  ;;  %2896 = vmatprep.mubr.f32.mxu1 %v2775_v18  ;;  %v2731_v26 = vld [vmem:[%s3462_s20 + $0x31] sm:$0xff] }
 0x145   : > { %1889 = vmatprep.mubr.f32.mxu0 %v4473_v20 }
 0x146   : > { %v4484_v46 = vpop.f32.mrb[18].mxu1 }
 0x147   : > { %2897 = vmatmul.mubr.f32.gmra.mrb[124].mxu1 %v2776_v35  ;;  %v1338_v49 = vpop.f32.mrb[19].mxu1 }
 0x148   : > { %1890 = vmatmul.mubr.f32.gmra.mrb[60].mxu0 %v4409_v10  ;;  %2899 = vmatprep.mubr.f32.mxu1 %v2777_v38 }
 0x149   : > { %1894 = vmatprep.mubr.f32.mxu0 %v4482_v45 }
 0x14a   : > { %v4490_v0 = vpop.f32.mrb[20].mxu1 }
 0x14b   : > { %2900 = vmatmul.mubr.f32.gmra.mrb[126].mxu1 %v2778_v60  ;;  %v1343_v6 = vpop.f32.mrb[21].mxu1 }
 0x14c   : > { %1895 = vmatmul.mubr.f32.gmra.mrb[62].mxu0 %v4416_v19  ;;  %2902 = vmatprep.mubr.f32.mxu1 %v5028_v1 }
 0x14d   : > { %1964 = vmatprep.mubr.f32.mxu0 %v2731_v26 }
 0x14e   : > { %v4496_v57 = vpop.f32.mrb[22].mxu1 }
 0x14f   : > { %2903 = vmatmul.mubr.f32.gmra.mrb[128].mxu1 %v5029_v9  ;;  %v1348_v10 = vpop.f32.mrb[23].mxu1  ;;  %v2734_v9 = vld [vmem:[%s3462_s20 + $0x51] sm:$0xff] }
 0x150   : > { %1965 = vmatmul.mubr.f32.vlgmr.msra.gmra.mrb[0].mxu0 %v2699_v23  ;;  %2905 = vmatprep.mubr.f32.mxu1 %v5030_v14 }
 0x151   : > { %1969 = vmatprep.mubr.f32.mxu0 %v2732_v28 }
 0x152   : > { %v4502_v19 = vpop.f32.mrb[24].mxu1 }
 0x153   : > { %2906 = vmatmul.mubr.f32.gmra.mrb[130].mxu1 %v5032_v3  ;;  %v1353_v1 = vpop.f32.mrb[25].mxu1  ;;  %v2735_v3 = vld [vmem:[%s3462_s20 + $0x61] sm:$0xff] }
 0x154   : > { %1970 = vmatmul.mubr.f32.gmra.mrb[2].mxu0 %v2700_v52  ;;  %2908 = vmatprep.mubr.f32.mxu1 %v5034_v40 }
 0x155   : > { %1974 = vmatprep.mubr.f32.mxu0 %v2733_v27 }
 0x156   : > { %v4508_v32 = vpop.f32.mrb[26].mxu1 }
 0x157   : > { %2909 = vmatmul.mubr.f32.gmra.mrb[132].mxu1 %v5035_v59  ;;  %v1358_v14 = vpop.f32.mrb[27].mxu1 }
 0x158   : > { %1975 = vmatmul.mubr.f32.gmra.mrb[4].mxu0 %v2701_v37  ;;  %2911 = vmatprep.mubr.f32.mxu1 %v5036_v48 }
 0x159   : > { %1979 = vmatprep.mubr.f32.mxu0 %v2734_v9 }
 0x15a   : > { %v4514_v13 = vpop.f32.mrb[28].mxu1 }
 0x15b   : > { %2912 = vmatmul.mubr.f32.gmra.mrb[134].mxu1 %v5037_v8  ;;  %v1363_v40 = vpop.f32.mrb[29].mxu1  ;;  %v2738_v8 = vld [vmem:[%s3462_s20 + $0x81] sm:$0xff] }
 0x15c   : > { %1980 = vmatmul.mubr.f32.gmra.mrb[6].mxu0 %v2702_v36  ;;  %2914 = vmatprep.mubr.f32.mxu1 %v5038_v12  ;;  %v2706_v12 = vld [vmem:[%s3462_s20 + $0x80] sm:$0xff]  ;;  %s2797_s20 = sshll.u32 %s5043_s16, 8 }
 0x15d   : > { %1984 = vmatprep.mubr.f32.mxu0 %v2735_v3  ;;  %s4650_s7 = scalar_lea.vmem %s4898_s2, %s2797_s20 }
 0x15e   : > { %v4520_v59 = vpop.f32.mrb[30].mxu1 }
 0x15f   : > { %2915 = vmatmul.mubr.f32.gmra.mrb[136].mxu1 %v5039_v34  ;;  %v1368_v61 = vpop.f32.mrb[31].mxu1 }
 0x160   : > { %1985 = vmatmul.mubr.f32.gmra.mrb[8].mxu0 %v2703_v47  ;;  %2917 = vmatprep.mubr.f32.mxu1 %v5040_v55 }
 0x161   : > { %1989 = vmatprep.mubr.f32.mxu0 %v2736_v51 }
 0x162   : > { %v4526_v48 = vpop.f32.mrb[32].mxu1 }
 0x163   : > { %2918 = vmatmul.mubr.f32.gmra.mrb[138].mxu1 %v5041_v17  ;;  %v1373_v62 = vpop.f32.mrb[33].mxu1 }
 0x164   : > { %1990 = vmatmul.mubr.f32.gmra.mrb[10].mxu0 %v2704_v53  ;;  %2920 = vmatprep.mubr.f32.mxu1 %v4473_v20 }
 0x165   : > { %1994 = vmatprep.mubr.f32.mxu0 %v2737_v42 }
 0x166   : > { %v4533_v24 = vpop.f32.mrb[34].mxu1 }
 0x167   : > { %2921 = vmatmul.mubr.f32.gmra.mrb[140].mxu1 %v4482_v45  ;;  %v1378_v16 = vpop.f32.mrb[35].mxu1 }
 0x168   : > { %1995 = vmatmul.mubr.f32.gmra.mrb[12].mxu0 %v2705_v15  ;;  %2923 = vmatprep.mubr.f32.mxu1 %v2793_v58 }
 0x169   : > { %1999 = vmatprep.mubr.f32.mxu0 %v2738_v8 }
 0x16a   : > { %v4538_v25 = vpop.f32.mrb[36].mxu1 }
 0x16b   : > { %2924 = vmatmul.mubr.f32.gmra.mrb[142].mxu1 %v2794_v33  ;;  %v1383_v21 = vpop.f32.mrb[37].mxu1 }
 0x16c   : > { %2000 = vmatmul.mubr.f32.gmra.mrb[14].mxu0 %v2706_v12 }
 0x16e   : > { %v4540_v30 = vpop.f32.mrb[38].mxu1 }
 0x16f   : > { %v1388_v34 = vpop.f32.mrb[39].mxu1 }
 0x172   : > { %v4542_v39 = vpop.f32.mrb[40].mxu1 }
 0x173   : > { %v1393_v50 = vpop.f32.mrb[41].mxu1 }
 0x176   : > { %v4544_v54 = vpop.f32.mrb[42].mxu1 }
 0x177   : > { %v1398_v55 = vpop.f32.mrb[43].mxu1 }
 0x17a   : > { %v4546_v63 = vpop.f32.mrb[44].mxu1 }
 0x17b   : > { %v1403_v5 = vpop.f32.mrb[45].mxu1 }
 0x17e   : > { %v4548_v11 = vpop.f32.mrb[46].mxu1 }
 0x17f   : > { %v1408_v17 = vpop.f32.mrb[47].mxu1 }
 0x182   : > { %v4550_v18 = vpop.f32.mrb[48].mxu1 }
 0x183   : > { %v1413_v20 = vpop.f32.mrb[49].mxu1 }
 0x186   : > { %v4552_v31 = vpop.f32.mrb[50].mxu1 }
 0x187   : > { %v1418_v35 = vpop.f32.mrb[51].mxu1 }
 0x18a   : > { %v4554_v38 = vpop.f32.mrb[52].mxu1 }
 0x18b   : > { %v1423_v45 = vpop.f32.mrb[53].mxu1 }
 0x18e   : > { %v4556_v49 = vpop.f32.mrb[54].mxu1 }
 0x18f   : > { %v1428_v60 = vpop.f32.mrb[55].mxu1 }
 0x192   : > { %v4558_v26 = vpop.f32.mrb[56].mxu1 }
 0x193   : > { %v1433_v6 = vpop.f32.mrb[57].mxu1 }
 0x196   : > { %v4560_v23 = vpop.f32.mrb[58].mxu1 }
 0x197   : > { %v1438_v28 = vpop.f32.mrb[59].mxu1 }
 0x19a   : > { %v4562_v10 = vpop.f32.mrb[60].mxu1 }
 0x19b   : > { %v1443_v52 = vpop.f32.mrb[61].mxu1 }
 0x19e   : > { %v4564_v27 = vpop.f32.mrb[62].mxu1 }
 0x19f   : > { %v1448_v1 = vpop.f32.mrb[63].mxu1 }
 0x1a2   : > { %v2006_v37 = vpop.f32.mrb[64].mxu1 }
 0x1a3   : > { %v2008_v9 = vpop.f32.mrb[65].mxu1 }
 0x1a6   : > { %v2011_v14 = vpop.f32.mrb[66].mxu1 }
 0x1a7   : > { %v2013_v36 = vpop.f32.mrb[67].mxu1 }
 0x1aa   : > { %v2016_v3 = vpop.f32.mrb[68].mxu1 }
 0x1ab   : > { %v2018_v40 = vpop.f32.mrb[69].mxu1 }
 0x1ae   : > { %v2021_v47 = vpop.f32.mrb[70].mxu1 }
 0x1af   : > { %v2023_v51 = vpop.f32.mrb[71].mxu1 }
 0x1b2   : > { %v2026_v61 = vpop.f32.mrb[72].mxu1 }
 0x1b3   : > { %v2028_v53 = vpop.f32.mrb[73].mxu1 }
 0x1b6   : > { %v2031_v42 = vpop.f32.mrb[74].mxu1 }
 0x1b7   : > { %v2033_v62 = vpop.f32.mrb[75].mxu1 }
 0x1ba   : > { %v2036_v15 = vpop.f32.mrb[76].mxu1 }
 0x1bb   : > { %v2038_v58 = vpop.f32.mrb[77].mxu1 }
 0x1be   : > { %v2041_v8 = vpop.f32.mrb[78].mxu1 }
 0x1bf   : > { %v2043_v16 = vpop.f32.mrb[79].mxu1 }
 0x1c2   : > { %v2046_v33 = vpop.f32.mrb[80].mxu1 }
 0x1c3   : > { %v1781_v12 = vpop.f32.mrb[16].mxu0  ;;  %v2048_v21 = vpop.f32.mrb[81].mxu1 }
 0x1c4   : > { %v3190_v34 = vadd.f32 %v1781_v12, %v4475_v29  ;;  %v1783_v50 = vpop.f32.mrb[17].mxu0 }
 0x1c6   : > { %v4567_v55 = vadd.f32 %v3190_v34, %v2006_v37  ;;  %v2051_v5 = vpop.f32.mrb[82].mxu1 }
 0x1c7   : > { %v1786_v17 = vpop.f32.mrb[18].mxu0  ;;  %v2053_v20 = vpop.f32.mrb[83].mxu1 }
 0x1c8   : > { %v3192_v35 = vadd.f32 %v1786_v17, %v4484_v46  ;;  %v1788_v45 = vpop.f32.mrb[19].mxu0 }
 0x1ca   : > { %v4570_v60 = vadd.f32 %v3192_v35, %v2011_v14  ;;  %v2056_v6 = vpop.f32.mrb[84].mxu1 }
 0x1cb   : > { %v1791_v28 = vpop.f32.mrb[20].mxu0  ;;  %v2058_v52 = vpop.f32.mrb[85].mxu1 }
 0x1cc   : > { %v3194_v1 = vadd.f32 %v1791_v28, %v4490_v0  ;;  %v1793_v9 = vpop.f32.mrb[21].mxu0 }
 0x1ce   : > { %v4573_v36 = vadd.f32 %v3194_v1, %v2016_v3  ;;  %v2061_v29 = vpop.f32.mrb[86].mxu1 }
 0x1cf   : > { %v1796_v40 = vpop.f32.mrb[22].mxu0  ;;  %v2063_v37 = vpop.f32.mrb[87].mxu1 }
 0x1d0   : > { %v3196_v51 = vadd.f32 %v1796_v40, %v4496_v57  ;;  %v1798_v53 = vpop.f32.mrb[23].mxu0 }
 0x1d2   : > { %v4576_v62 = vadd.f32 %v3196_v51, %v2021_v47  ;;  %v2066_v46 = vpop.f32.mrb[88].mxu1 }
 0x1d3   : > { %v1801_v58 = vpop.f32.mrb[24].mxu0  ;;  %v2068_v14 = vpop.f32.mrb[89].mxu1 }
 0x1d4   : > { %v3198_v16 = vadd.f32 %v1801_v58, %v4502_v19  ;;  %v1803_v12 = vpop.f32.mrb[25].mxu0 }
 0x1d6   : > { %v4579_v21 = vadd.f32 %v3198_v16, %v2026_v61  ;;  %v2071_v0 = vpop.f32.mrb[90].mxu1 }
 0x1d7   : > { %v1806_v34 = vpop.f32.mrb[26].mxu0  ;;  %v2073_v3 = vpop.f32.mrb[91].mxu1 }
 0x1d8   : > { %v3200_v50 = vadd.f32 %v1806_v34, %v4508_v32  ;;  %v1808_v17 = vpop.f32.mrb[27].mxu0 }
 0x1da   : > { %v4582_v20 = vadd.f32 %v3200_v50, %v2031_v42  ;;  %v2076_v57 = vpop.f32.mrb[92].mxu1 }
 0x1db   : > { %v1811_v35 = vpop.f32.mrb[28].mxu0  ;;  %v2078_v47 = vpop.f32.mrb[93].mxu1 }
 0x1dc   : > { %v3202_v45 = vadd.f32 %v1811_v35, %v4514_v13  ;;  %v1813_v28 = vpop.f32.mrb[29].mxu0 }
 0x1de   : > { %v4585_v52 = vadd.f32 %v3202_v45, %v2036_v15  ;;  %v2081_v19 = vpop.f32.mrb[94].mxu1 }
 0x1df   : > { %v1816_v1 = vpop.f32.mrb[30].mxu0  ;;  %v2083_v61 = vpop.f32.mrb[95].mxu1 }
 0x1e0   : > { %v3204_v9 = vadd.f32 %v1816_v1, %v4520_v59  ;;  %v1818_v40 = vpop.f32.mrb[31].mxu0 }
 0x1e2   : > { %v4588_v37 = vadd.f32 %v3204_v9, %v2041_v8  ;;  %v2086_v32 = vpop.f32.mrb[96].mxu1 }
 0x1e3   : > { %v1821_v51 = vpop.f32.mrb[32].mxu0  ;;  %v2088_v42 = vpop.f32.mrb[97].mxu1 }
 0x1e4   : > { %v3206_v53 = vadd.f32 %v1821_v51, %v4526_v48  ;;  %v1823_v58 = vpop.f32.mrb[33].mxu0 }
 0x1e6   : > { %v4591_v14 = vadd.f32 %v3206_v53, %v2046_v33  ;;  %v2091_v13 = vpop.f32.mrb[98].mxu1 }
 0x1e7   : > { %v1826_v16 = vpop.f32.mrb[34].mxu0  ;;  %v2093_v15 = vpop.f32.mrb[99].mxu1 }
 0x1e8   : > { %v3208_v12 = vadd.f32 %v1826_v16, %v4533_v24  ;;  %v1828_v34 = vpop.f32.mrb[35].mxu0 }
 0x1ea   : > { %v4594_v3 = vadd.f32 %v3208_v12, %v2051_v5  ;;  %v2096_v59 = vpop.f32.mrb[100].mxu1 }
 0x1eb   : > { %v1831_v50 = vpop.f32.mrb[36].mxu0  ;;  %v2098_v8 = vpop.f32.mrb[101].mxu1 }
 0x1ec   : > { %v3210_v17 = vadd.f32 %v1831_v50, %v4538_v25  ;;  %v1833_v35 = vpop.f32.mrb[37].mxu0 }
 0x1ee   : > { %v4597_v47 = vadd.f32 %v3210_v17, %v2056_v6  ;;  %v2101_v48 = vpop.f32.mrb[102].mxu1 }
 0x1ef   : > { %v1836_v45 = vpop.f32.mrb[38].mxu0  ;;  %v2103_v33 = vpop.f32.mrb[103].mxu1 }
 0x1f0   : > { %v3212_v28 = vadd.f32 %v1836_v45, %v4540_v30  ;;  %v1838_v1 = vpop.f32.mrb[39].mxu0 }
 0x1f2   : > { %v4600_v61 = vadd.f32 %v3212_v28, %v2061_v29  ;;  %v2106_v24 = vpop.f32.mrb[104].mxu1 }
 0x1f3   : > { %v1841_v9 = vpop.f32.mrb[40].mxu0  ;;  %v2108_v5 = vpop.f32.mrb[105].mxu1 }
 0x1f4   : > { %v3214_v40 = vadd.f32 %v1841_v9, %v4542_v39  ;;  %v1843_v51 = vpop.f32.mrb[41].mxu0 }
 0x1f6   : > { %v4603_v42 = vadd.f32 %v3214_v40, %v2066_v46  ;;  %v4605_v25 = vpop.f32.mrb[106].mxu1 }
 0x1f7   : > { %v1846_v6 = vpop.f32.mrb[42].mxu0  ;;  %v2113_v53 = vpop.f32.mrb[107].mxu1 }
 0x1f8   : > { %v3216_v58 = vadd.f32 %v1846_v6, %v4544_v54  ;;  %v1848_v16 = vpop.f32.mrb[43].mxu0 }
 0x1fa   : > { %v4608_v15 = vpop.f32.mrb[108].mxu1  ;;  %v4610_v30 = vadd.f32 %v3216_v58, %v2071_v0 }
 0x1fb   : > { %v1851_v29 = vpop.f32.mrb[44].mxu0  ;;  %v2118_v12 = vpop.f32.mrb[109].mxu1 }
 0x1fc   : > { %v3218_v34 = vadd.f32 %v1851_v29, %v4546_v63  ;;  %v1853_v50 = vpop.f32.mrb[45].mxu0 }
 0x1fe   : > { %v4613_v39 = vpop.f32.mrb[110].mxu1  ;;  %v4615_v46 = vadd.f32 %v3218_v34, %v2076_v57 }
 0x1ff   : > { %v1856_v8 = vpop.f32.mrb[46].mxu0  ;;  %v2123_v17 = vpop.f32.mrb[111].mxu1 }
 0x200   : > { %v3220_v35 = vadd.f32 %v1856_v8, %v4548_v11  ;;  %v1858_v45 = vpop.f32.mrb[47].mxu0 }
 0x202   : > { %v4618_v54 = vpop.f32.mrb[112].mxu1  ;;  %v4620_v33 = vadd.f32 %v3220_v35, %v2081_v19 }
 0x203   : > { %v1861_v0 = vpop.f32.mrb[48].mxu0  ;;  %v4622_v28 = vpop.f32.mrb[113].mxu1 }
 0x204   : > { %v3222_v1 = vadd.f32 %v1861_v0, %v4550_v18  ;;  %v1863_v63 = vpop.f32.mrb[49].mxu0 }
 0x206   : > { %v4625_v9 = vpop.f32.mrb[114].mxu1  ;;  %v4627_v57 = vadd.f32 %v3222_v1, %v2086_v32 }
 0x207   : > { %v1866_v5 = vpop.f32.mrb[50].mxu0  ;;  %v4629_v40 = vpop.f32.mrb[115].mxu1 }
 0x208   : > { %v3224_v11 = vadd.f32 %v1866_v5, %v4552_v31  ;;  %v1868_v51 = vpop.f32.mrb[51].mxu0 }
 0x20a   : > { %v4632_v6 = vpop.f32.mrb[116].mxu1  ;;  %v4634_v19 = vadd.f32 %v3224_v11, %v2091_v13 }
 0x20b   : > { %v1871_v53 = vpop.f32.mrb[52].mxu0  ;;  %v4636_v58 = vpop.f32.mrb[117].mxu1 }
 0x20c   : > { %v3226_v18 = vadd.f32 %v1871_v53, %v4554_v38  ;;  %v1873_v16 = vpop.f32.mrb[53].mxu0 }
 0x20e   : > { %v4639_v29 = vpop.f32.mrb[118].mxu1  ;;  %v4641_v32 = vadd.f32 %v3226_v18, %v2096_v59 }
 0x20f   : > { %v1876_v12 = vpop.f32.mrb[54].mxu0  ;;  %v4643_v34 = vpop.f32.mrb[119].mxu1 }
 0x210   : > { %v3228_v31 = vadd.f32 %v1876_v12, %v4556_v49  ;;  %v1878_v50 = vpop.f32.mrb[55].mxu0 }
 0x212   : > { %v2892_v38 = vpop.f32.mrb[120].mxu1  ;;  %v4652_v13 = vadd.f32 %v3228_v31, %v2101_v48 }
 0x213   : > { %v1881_v8 = vpop.f32.mrb[56].mxu0  ;;  %v4655_v59 = vadd.f32 %v4570_v60, %v2892_v38  ;;  %v2231_v17 = vpop.f32.mrb[121].mxu1 }
 0x214   : > { %v3230_v49 = vadd.f32 %v1881_v8, %v4558_v26  ;;  %v1883_v35 = vpop.f32.mrb[57].mxu0  ;;  %v4659_v45 = vadd.f32 %v4567_v55, %v2231_v17 }
 0x215   : > { %2359 = vst [vmem:[%s4650_s7 + $0x48] sm:$0xff] %v4655_v59 }
 0x216   : > { %2358 = vst [vmem:[%s4650_s7 + $0x40] sm:$0xff] %v4659_v45  ;;  %v2895_v0 = vpop.f32.mrb[122].mxu1  ;;  %v4665_v48 = vadd.f32 %v3230_v49, %v2106_v24 }
 0x217   : > { %v1886_v1 = vpop.f32.mrb[58].mxu0  ;;  %v4668_v60 = vadd.f32 %v4576_v62, %v2895_v0  ;;  %v2241_v63 = vpop.f32.mrb[123].mxu1 }
 0x218   : > { %v3232_v26 = vadd.f32 %v1886_v1, %v4560_v23  ;;  %v1888_v5 = vpop.f32.mrb[59].mxu0  ;;  %v4672_v55 = vadd.f32 %v4573_v36, %v2241_v63 }
 0x219   : > { %2361 = vst [vmem:[%s4650_s7 + $0x58] sm:$0xff] %v4668_v60 }
 0x21a   : > { %2360 = vst [vmem:[%s4650_s7 + $0x50] sm:$0xff] %v4672_v55  ;;  %v2898_v11 = vpop.f32.mrb[124].mxu1  ;;  %v4679_v24 = vadd.f32 %v3232_v26, %v4605_v25 }
 0x21b   : > { %v1891_v51 = vpop.f32.mrb[60].mxu0  ;;  %v4682_v62 = vadd.f32 %v4582_v20, %v2898_v11  ;;  %v2251_v53 = vpop.f32.mrb[125].mxu1 }
 0x21c   : > { %v3234_v23 = vadd.f32 %v1891_v51, %v4562_v10  ;;  %v1893_v18 = vpop.f32.mrb[61].mxu0  ;;  %v4686_v36 = vadd.f32 %v4579_v21, %v2251_v53 }
 0x21d   : > { %2363 = vst [vmem:[%s4650_s7 + $0x68] sm:$0xff] %v4682_v62 }
 0x21e   : > { %2362 = vst [vmem:[%s4650_s7 + $0x60] sm:$0xff] %v4686_v36  ;;  %v2901_v16 = vpop.f32.mrb[126].mxu1  ;;  %v4693_v25 = vadd.f32 %v3234_v23, %v4608_v15 }
 0x21f   : > { %v1896_v12 = vpop.f32.mrb[62].mxu0  ;;  %v4696_v20 = vadd.f32 %v4588_v37, %v2901_v16  ;;  %v2261_v31 = vpop.f32.mrb[127].mxu1 }
 0x220   : > { %v3236_v10 = vadd.f32 %v1896_v12, %v4564_v27  ;;  %v1898_v50 = vpop.f32.mrb[63].mxu0  ;;  %v4700_v21 = vadd.f32 %v4585_v52, %v2261_v31 }
 0x221   : > { %2365 = vst [vmem:[%s4650_s7 + $0x78] sm:$0xff] %v4696_v20 }
 0x222   : > { %2364 = vst [vmem:[%s4650_s7 + $0x70] sm:$0xff] %v4700_v21  ;;  %v2904_v15 = vpop.f32.mrb[128].mxu1  ;;  %v4707_v38 = vadd.f32 %v3236_v10, %v4613_v39 }
 0x223   : > { %v1966_v8 = vpop.f32.mrb[0].mxu0  ;;  %v4710_v37 = vadd.f32 %v4594_v3, %v2904_v15  ;;  %v2271_v17 = vpop.f32.mrb[129].mxu1 }
 0x224   : > { %v3182_v27 = vadd.f32 %v1966_v8, %v4423_v22  ;;  %v1968_v52 = vpop.f32.mrb[1].mxu0  ;;  %v4714_v49 = vadd.f32 %v4591_v14, %v2271_v17 }
 0x225   : > { %2367 = vst [vmem:[%s4650_s7 + $0x88] sm:$0xff] %v4710_v37 }
 0x226   : > { %v2192_v35 = vadd.f32 %v3182_v27, %v4622_v28  ;;  %2366 = vst [vmem:[%s4650_s7 + $0x80] sm:$0xff] %v4714_v49  ;;  %v2907_v39 = vpop.f32.mrb[130].mxu1 }
 0x227   : > { %v1971_v0 = vpop.f32.mrb[2].mxu0  ;;  %v4722_v3 = vadd.f32 %v4600_v61, %v2907_v39  ;;  %v2281_v1 = vpop.f32.mrb[131].mxu1 }
 0x228   : > { %2350 = vst [vmem:[%s4650_s7] sm:$0xff] %v2192_v35  ;;  %v3183_v22 = vadd.f32 %v1971_v0, %v4430_v41  ;;  %v1973_v63 = vpop.f32.mrb[3].mxu0  ;;  %v4727_v14 = vadd.f32 %v4597_v47, %v2281_v1  ;;  %v2420_v5 = vmul.f32 %v2192_v35, %v2192_v35 }
 0x229   : > { %2369 = vst [vmem:[%s4650_s7 + $0x98] sm:$0xff] %v4722_v3 }
 0x22a   : > { %v2197_v28 = vadd.f32 %v3183_v22, %v4618_v54  ;;  %2368 = vst [vmem:[%s4650_s7 + $0x90] sm:$0xff] %v4727_v14  ;;  %v2910_v26 = vpop.f32.mrb[132].mxu1 }
 0x22b   : > { %v1976_v61 = vpop.f32.mrb[4].mxu0  ;;  %v4735_v11 = vadd.f32 %v4610_v30, %v2910_v26  ;;  %v2291_v41 = vpop.f32.mrb[133].mxu1 }
 0x22c   : > { %2351 = vst [vmem:[%s4650_s7 + $0x8] sm:$0xff] %v2197_v28  ;;  %v2382_v51 = vadd.f32 %v2197_v28, %v2192_v35  ;;  %v2421_v53 = vmul.f32 %v2197_v28, %v2197_v28  ;;  %v3184_v47 = vadd.f32 %v1976_v61, %v4436_v56  ;;  %v1978_v23 = vpop.f32.mrb[5].mxu0  ;;  %v4740_v54 = vadd.f32 %v4603_v42, %v2291_v41 }
 0x22d   : > { %2371 = vst [vmem:[%s4650_s7 + $0xa8] sm:$0xff] %v4735_v11 }
 0x22e   : > { %v2452_v18 = vadd.f32 %v2421_v53, %v2420_v5  ;;  %v2202_v16 = vadd.f32 %v3184_v47, %v4629_v40  ;;  %2370 = vst [vmem:[%s4650_s7 + $0xa0] sm:$0xff] %v4740_v54  ;;  %v2913_v30 = vpop.f32.mrb[134].mxu1 }
 0x22f   : > { %v1981_v12 = vpop.f32.mrb[6].mxu0  ;;  %v4748_v31 = vadd.f32 %v4620_v33, %v2913_v30  ;;  %v2301_v56 = vpop.f32.mrb[135].mxu1 }
 0x230   : > { %2352 = vst [vmem:[%s4650_s7 + $0x10] sm:$0xff] %v2202_v16  ;;  %v2383_v10 = vadd.f32 %v2382_v51, %v2202_v16  ;;  %v2422_v50 = vmul.f32 %v2202_v16, %v2202_v16  ;;  %v3185_v42 = vadd.f32 %v1981_v12, %v4442_v7  ;;  %v1983_v15 = vpop.f32.mrb[7].mxu0  ;;  %v4753_v8 = vadd.f32 %v4615_v46, %v2301_v56 }
 0x231   : > { %2373 = vst [vmem:[%s4650_s7 + $0xb8] sm:$0xff] %v4748_v31 }
 0x232   : > { %v2453_v40 = vadd.f32 %v2452_v18, %v2422_v50  ;;  %v2207_v17 = vadd.f32 %v3185_v42, %v4625_v9  ;;  %2372 = vst [vmem:[%s4650_s7 + $0xb0] sm:$0xff] %v4753_v8  ;;  %v2916_v33 = vpop.f32.mrb[136].mxu1 }
 0x233   : > { %v1986_v27 = vpop.f32.mrb[8].mxu0  ;;  %v4761_v52 = vadd.f32 %v4634_v19, %v2916_v33  ;;  %v2311_v7 = vpop.f32.mrb[137].mxu1 }
 0x234   : > { %2353 = vst [vmem:[%s4650_s7 + $0x18] sm:$0xff] %v2207_v17  ;;  %v2384_v35 = vadd.f32 %v2383_v10, %v2207_v17  ;;  %v2423_v39 = vmul.f32 %v2207_v17, %v2207_v17  ;;  %v3186_v46 = vadd.f32 %v1986_v27, %v4448_v4  ;;  %v1988_v0 = vpop.f32.mrb[9].mxu0  ;;  %v4766_v1 = vadd.f32 %v4627_v57, %v2311_v7 }
 0x235   : > { %2375 = vst [vmem:[%s4650_s7 + $0xc8] sm:$0xff] %v4761_v52  ;;  %v2428_v27 = vmul.f32 %v4659_v45, %v4659_v45 }
 0x236   : > { %v2454_v9 = vadd.f32 %v2453_v40, %v2423_v39  ;;  %v2212_v22 = vadd.f32 %v3186_v46, %v4636_v58  ;;  %2374 = vst [vmem:[%s4650_s7 + $0xc0] sm:$0xff] %v4766_v1  ;;  %v2919_v19 = vpop.f32.mrb[138].mxu1 }
 0x237   : > { %v1991_v63 = vpop.f32.mrb[10].mxu0  ;;  %v4774_v28 = vadd.f32 %v4652_v13, %v2919_v19  ;;  %v2321_v4 = vpop.f32.mrb[139].mxu1 }
 0x238   : > { %2354 = vst [vmem:[%s4650_s7 + $0x20] sm:$0xff] %v2212_v22  ;;  %v2385_v26 = vadd.f32 %v2384_v35, %v2212_v22  ;;  %v2424_v5 = vmul.f32 %v2212_v22, %v2212_v22  ;;  %v3187_v57 = vadd.f32 %v1991_v63, %v4454_v43  ;;  %v1993_v61 = vpop.f32.mrb[11].mxu0  ;;  %v4779_v41 = vadd.f32 %v4641_v32, %v2321_v4 }
 0x239   : > { %2377 = vst [vmem:[%s4650_s7 + $0xd8] sm:$0xff] %v4774_v28 }
 0x23a   : > { %v2455_v58 = vadd.f32 %v2454_v9, %v2424_v5  ;;  %v2217_v51 = vadd.f32 %v3187_v57, %v4632_v6  ;;  %2376 = vst [vmem:[%s4650_s7 + $0xd0] sm:$0xff] %v4779_v41  ;;  %v2922_v13 = vpop.f32.mrb[140].mxu1  ;;  %v2431_v9 = vmul.f32 %v4668_v60, %v4668_v60 }
 0x23b   : > { %v1996_v53 = vpop.f32.mrb[12].mxu0  ;;  %v4787_v47 = vadd.f32 %v4679_v24, %v2922_v13  ;;  %v2331_v43 = vpop.f32.mrb[141].mxu1 }
 0x23c   : > { %2355 = vst [vmem:[%s4650_s7 + $0x28] sm:$0xff] %v2217_v51  ;;  %v2386_v23 = vadd.f32 %v2385_v26, %v2217_v51  ;;  %v2425_v18 = vmul.f32 %v2217_v51, %v2217_v51  ;;  %v3188_v32 = vadd.f32 %v1996_v53, %v4460_v44  ;;  %v1998_v16 = vpop.f32.mrb[13].mxu0  ;;  %v4792_v30 = vadd.f32 %v4665_v48, %v2331_v43 }
 0x23d   : > { %2379 = vst [vmem:[%s4650_s7 + $0xe8] sm:$0xff] %v4787_v47 }
 0x23e   : > { %v2456_v6 = vadd.f32 %v2455_v58, %v2425_v18  ;;  %v2222_v12 = vadd.f32 %v3188_v32, %v4643_v34  ;;  %2378 = vst [vmem:[%s4650_s7 + $0xe0] sm:$0xff] %v4792_v30  ;;  %v2925_v24 = vpop.f32.mrb[142].mxu1 }
 0x23f   : > { %v2001_v56 = vpop.f32.mrb[14].mxu0  ;;  %v4800_v10 = vadd.f32 %v4707_v38, %v2925_v24  ;;  %v2341_v44 = vpop.f32.mrb[143].mxu1 }
 0x240   : > { %2356 = vst [vmem:[%s4650_s7 + $0x30] sm:$0xff] %v2222_v12  ;;  %v2387_v50 = vadd.f32 %v2386_v23, %v2222_v12  ;;  %v2426_v42 = vmul.f32 %v2222_v12, %v2222_v12  ;;  %v3189_v48 = vadd.f32 %v2001_v56, %v4466_v2  ;;  %v2003_v15 = vpop.f32.mrb[15].mxu0  ;;  %v4805_v40 = vadd.f32 %v4693_v25, %v2341_v44 }
 0x241   : > { %2381 = vst [vmem:[%s4650_s7 + $0xf8] sm:$0xff] %v4800_v10  ;;  %v2429_v25 = vmul.f32 %v4655_v59, %v4655_v59 }
 0x242   : > { %v2457_v34 = vadd.f32 %v2456_v6, %v2426_v42  ;;  %v2227_v17 = vadd.f32 %v3189_v48, %v4639_v29  ;;  %2380 = vst [vmem:[%s4650_s7 + $0xf0] sm:$0xff] %v4805_v40  ;;  %v2430_v29 = vmul.f32 %v4672_v55, %v4672_v55 }
 0x244   : > { %2357 = vst [vmem:[%s4650_s7 + $0x38] sm:$0xff] %v2227_v17  ;;  %v2388_v38 = vadd.f32 %v2387_v50, %v2227_v17  ;;  %v2427_v33 = vmul.f32 %v2227_v17, %v2227_v17 }
 0x246   : > { %v2389_v7 = vadd.f32 %v2388_v38, %v4659_v45  ;;  %v2458_v2 = vadd.f32 %v2457_v34, %v2427_v33  ;;  %v2432_v45 = vmul.f32 %v4686_v36, %v4686_v36 }
 0x248   : > { %v2390_v35 = vadd.f32 %v2389_v7, %v4655_v59  ;;  %v2459_v39 = vadd.f32 %v2458_v2, %v2428_v27  ;;  %v2433_v59 = vmul.f32 %v4682_v62, %v4682_v62 }
 0x24a   : > { %v2391_v46 = vadd.f32 %v2390_v35, %v4672_v55  ;;  %v2460_v0 = vadd.f32 %v2459_v39, %v2429_v25  ;;  %v2434_v55 = vmul.f32 %v4700_v21, %v4700_v21 }
 0x24c   : > { %v2392_v22 = vadd.f32 %v2391_v46, %v4668_v60  ;;  %v2461_v19 = vadd.f32 %v2460_v0, %v2430_v29  ;;  %v2435_v60 = vmul.f32 %v4696_v20, %v4696_v20  ;;  %v2450_v0 = vmul.f32 %v4805_v40, %v4805_v40 }
 0x24e   : > { %v2393_v63 = vadd.f32 %v2392_v22, %v4686_v36  ;;  %v2462_v4 = vadd.f32 %v2461_v19, %v2431_v9  ;;  %v2436_v36 = vmul.f32 %v4714_v49, %v4714_v49  ;;  %v2451_v9 = vmul.f32 %v4800_v10, %v4800_v10 }
 0x250   : > { %v2394_v26 = vadd.f32 %v2393_v63, %v4682_v62  ;;  %v2463_v5 = vadd.f32 %v2462_v4, %v2432_v45  ;;  %v2437_v62 = vmul.f32 %v4710_v37, %v4710_v37 }
 0x252   : > { %v2395_v57 = vadd.f32 %v2394_v26, %v4700_v21  ;;  %v2464_v61 = vadd.f32 %v2463_v5, %v2433_v59  ;;  %v2438_v21 = vmul.f32 %v4727_v14, %v4727_v14 }
 0x254   : > { %v2396_v58 = vadd.f32 %v2395_v57, %v4696_v20  ;;  %v2465_v51 = vadd.f32 %v2464_v61, %v2434_v55  ;;  %v2439_v20 = vmul.f32 %v4722_v3, %v4722_v3 }
 0x256   : > { %v2397_v13 = vadd.f32 %v2396_v58, %v4714_v49  ;;  %v2466_v53 = vadd.f32 %v2465_v51, %v2435_v60  ;;  %v2440_v49 = vmul.f32 %v4740_v54, %v4740_v54 }
 0x258   : > { %v2398_v43 = vadd.f32 %v2397_v13, %v4710_v37  ;;  %v2467_v23 = vadd.f32 %v2466_v53, %v2436_v36  ;;  %v2441_v37 = vmul.f32 %v4735_v11, %v4735_v11 }
 0x25a   : > { %v2468_v18 = vadd.f32 %v2467_v23, %v2437_v62  ;;  %v2399_v32 = vadd.f32 %v2398_v43, %v4727_v14  ;;  %v2442_v14 = vmul.f32 %v4753_v8, %v4753_v8 }
 0x25c   : > { %v2400_v16 = vadd.f32 %v2399_v32, %v4722_v3  ;;  %v2469_v6 = vadd.f32 %v2468_v18, %v2438_v21  ;;  %v2443_v3 = vmul.f32 %v4748_v31, %v4748_v31 }
 0x25e   : > { %v2401_v12 = vadd.f32 %v2400_v16, %v4740_v54  ;;  %v2470_v24 = vadd.f32 %v2469_v6, %v2439_v20  ;;  %v2444_v54 = vmul.f32 %v4766_v1, %v4766_v1 }
 0x260   : > { %v2402_v56 = vadd.f32 %v2401_v12, %v4735_v11  ;;  %v2471_v44 = vadd.f32 %v2470_v24, %v2440_v49  ;;  %v2445_v11 = vmul.f32 %v4761_v52, %v4761_v52 }
 0x262   : > { %v2403_v50 = vadd.f32 %v2402_v56, %v4753_v8  ;;  %v2472_v42 = vadd.f32 %v2471_v44, %v2441_v37  ;;  %v2446_v8 = vmul.f32 %v4779_v41, %v4779_v41 }
 0x264   : > { %v2404_v48 = vadd.f32 %v2403_v50, %v4748_v31  ;;  %v2473_v15 = vadd.f32 %v2472_v42, %v2442_v14  ;;  %v2447_v31 = vmul.f32 %v4774_v28, %v4774_v28 }
 0x266   : > { %v2405_v34 = vadd.f32 %v2404_v48, %v4766_v1  ;;  %v2474_v17 = vadd.f32 %v2473_v15, %v2443_v3  ;;  %v2448_v1 = vmul.f32 %v4792_v30, %v4792_v30 }
 0x268   : > { %v2406_v38 = vadd.f32 %v2405_v34, %v4761_v52  ;;  %v2475_v33 = vadd.f32 %v2474_v17, %v2444_v54  ;;  %v2449_v52 = vmul.f32 %v4787_v47, %v4787_v47 }
 0x26a   : > { %v2407_v27 = vadd.f32 %v2406_v38, %v4779_v41  ;;  %v2476_v7 = vadd.f32 %v2475_v33, %v2445_v11 }
 0x26c   : > { %v2408_v2 = vadd.f32 %v2407_v27, %v4774_v28  ;;  %v2477_v25 = vadd.f32 %v2476_v7, %v2446_v8 }
 0x26e   : > { %v2409_v35 = vadd.f32 %v2408_v2, %v4792_v30  ;;  %v2478_v39 = vadd.f32 %v2477_v25, %v2447_v31 }
 0x270   : > { %v2410_v29 = vadd.f32 %v2409_v35, %v4787_v47  ;;  %v2479_v46 = vadd.f32 %v2478_v39, %v2448_v1 }
 0x272   : > { %v2411_v41 = vadd.f32 %v2410_v29, %v4805_v40  ;;  %v2480_v28 = vadd.f32 %v2479_v46, %v2449_v52 }
 0x274   : > { %v2412_v30 = vadd.f32 %v2411_v41, %v4800_v10  ;;  %v2481_v22 = vadd.f32 %v2480_v28, %v2450_v0 }
 0x276   : > { %v2413_v19 = vrot.slane %v2412_v30, 4  ;;  %v2482_v45 = vadd.f32 %v2481_v22, %v2451_v9 }
 0x278   : > { %v2414_v63 = vadd.f32 %v2413_v19, %v2412_v30  ;;  %v2483_v4 = vrot.slane %v2482_v45, 4 }
 0x27a   : > { %v2415_v47 = vrot.slane %v2414_v63, 2  ;;  %v2484_v59 = vadd.f32 %v2483_v4, %v2482_v45 }
 0x27c   : > { %v2416_v26 = vadd.f32 %v2415_v47, %v2414_v63  ;;  %v2485_v5 = vrot.slane %v2484_v59, 2 }
 0x27e   : > { %v2417_v55 = vrot.slane %v2416_v26, 1  ;;  %v2486_v57 = vadd.f32 %v2485_v5, %v2484_v59 }
 0x280   : > { %v2418_v40 = vadd.f32 %v2417_v55, %v2416_v26  ;;  %v2487_v61 = vrot.slane %v2486_v57, 1 }
 0x282   : > { %2419 = vst [vmem:[%s211_s10] sm:$0x1] %v2418_v40  ;;  %v2488_v10 = vadd.f32 %v2487_v61, %v2486_v57 }
 0x284   : > { %2489 = vst [vmem:[%s214_s13] sm:$0x1] %v2488_v10 }
 0x285 PF: > { %s15_s15 = sadd.s32 1, %s3334_s15  }
 0x286   : > { %p12_p4 = scmp.ge.s32.totalorder %s15_s15, 4  }
 0x288   :  { %14 = sbr.rel (!%p12_p4) target bundleno = 1 (0x1), region = 84 }

</bundles_post_ra>
